<compile_context>
chip_gen: v5e
topology: v5e:2x2
jax: 0.10.0
libtpu: 0.0.40
codegen_flags: <defaults>
</compile_context>

<pallas_src>
import functools
import math

import jax
import jax.numpy as jnp
from jax.experimental import pallas as pl
from jax.experimental.pallas import tpu as pltpu


# ----------------------------- tiling helpers -----------------------------

def _mxu_tile(dim, target):
    """Largest multiple-of-128 tile <= target that divides dim, else the full dim."""
    t = target
    while t >= 128:
        if dim % t == 0:
            return t
        t //= 2
    return dim


def _row_tile(dim, target):
    """Row (sublane) tile: multiple of 8 dividing dim, else the full dim."""
    t = target
    while t >= 8:
        if dim % t == 0:
            return t
        t //= 2
    return dim


# ----------------------------- Pallas kernels -----------------------------

def _mm_kernel(x_ref, w_ref, b_ref, o_ref, acc_ref, *, activation, trans_b):
    """Tiled matmul with f32 accumulator.  x:(tm,tk)  w:(tk,tn) or (tn,tk)."""
    @pl.when(pl.program_id(2) == 0)
    def _():
        acc_ref[...] = jnp.zeros_like(acc_ref)

    if trans_b:
        dn = (((1,), (1,)), ((), ()))     # contract x.K with w.K (w is [N, K])
    else:
        dn = (((1,), (0,)), ((), ()))     # standard [M,K] @ [K,N]
    acc_ref[...] += jax.lax.dot_general(
        x_ref[...], w_ref[...], dn, preferred_element_type=jnp.float32)

    @pl.when(pl.program_id(2) == pl.num_programs(2) - 1)
    def _():
        y = acc_ref[...] + b_ref[...]
        if activation == "relu":
            y = jnp.maximum(y, 0.0)
        o_ref[...] = y.astype(o_ref.dtype)


def _layernorm_kernel(x_ref, g_ref, b_ref, o_ref):
    x = x_ref[...].astype(jnp.float32)
    mu = jnp.mean(x, axis=-1, keepdims=True)
    var = jnp.mean(jnp.square(x - mu), axis=-1, keepdims=True)
    o_ref[...] = ((x - mu) * jax.lax.rsqrt(var + 1e-5)
                  * g_ref[...] + b_ref[...]).astype(o_ref.dtype)


def _attention_kernel(q_ref, k_ref, v_ref, o_ref, *, scale, causal):
    # q_ref: (1, Sq, H, Dh)  k_ref/v_ref: (1, Skv, H, Dh)  — one batch element.
    q = q_ref[0]                                    # [Sq, H, Dh] bf16
    k = k_ref[0]                                    # [Skv, H, Dh]
    v = v_ref[0]
    # scores: [H, Sq, Skv]; contraction over Dh without any explicit transpose.
    s = jnp.einsum('qhd,khd->hqk', q, k,
                   preferred_element_type=jnp.float32) * scale
    if causal:
        qi = jax.lax.broadcasted_iota(jnp.int32, s.shape, 1)
        kj = jax.lax.broadcasted_iota(jnp.int32, s.shape, 2)
        s = jnp.where(kj > qi, -1e30, s)            # large-negative, not -inf
    m = jnp.max(s, axis=-1, keepdims=True)
    p = jnp.exp(s - m)
    denom = jnp.sum(p, axis=-1, keepdims=True)      # [H, Sq, 1]
    o = jnp.einsum('hqk,khd->hqd', p.astype(v.dtype), v,
                   preferred_element_type=jnp.float32)  # [H, Sq, Dh]
    o = o * pl.reciprocal(denom, approx=True)       # normalize after PV (EUP slot)
    o_ref[0] = jnp.swapaxes(o, 0, 1).astype(o_ref.dtype)   # -> [Sq, H, Dh]


# ----------------------------- Pallas wrappers -----------------------------

def pallas_matmul(x, w, b, *, activation=None, trans_b=False,
                  out_dtype=jnp.float32, tm_t=256, tn_t=256, tk_t=512):
    """x: [M, K]; w: [K, N] (or [N, K] if trans_b); b: [N] -> [M, N]."""
    M, K = x.shape
    N = w.shape[0] if trans_b else w.shape[1]
    tm = _row_tile(M, tm_t)
    tn = _mxu_tile(N, tn_t)
    tk = _mxu_tile(K, tk_t)
    grid = (M // tm, N // tn, K // tk)

    if trans_b:
        w_spec = pl.BlockSpec((tn, tk), lambda i, j, k: (j, k))
    else:
        w_spec = pl.BlockSpec((tk, tn), lambda i, j, k: (k, j))

    kern = functools.partial(_mm_kernel, activation=activation, trans_b=trans_b)
    return pl.pallas_call(
        kern,
        out_shape=jax.ShapeDtypeStruct((M, N), out_dtype),
        grid=grid,
        in_specs=[pl.BlockSpec((tm, tk), lambda i, j, k: (i, k)),
                  w_spec,
                  pl.BlockSpec((1, tn), lambda i, j, k: (0, j))],
        out_specs=pl.BlockSpec((tm, tn), lambda i, j, k: (i, j)),
        scratch_shapes=[pltpu.VMEM((tm, tn), jnp.float32)],
        compiler_params=pltpu.CompilerParams(
            dimension_semantics=("parallel", "parallel", "arbitrary"),
            vmem_limit_bytes=48 * 1024 * 1024),
    )(x.astype(jnp.bfloat16), w.astype(jnp.bfloat16),
      b.reshape(1, N).astype(jnp.float32))


def pallas_layernorm(x2d, g, b):
    M, D = x2d.shape
    tm = _row_tile(M, 256)
    return pl.pallas_call(
        _layernorm_kernel,
        out_shape=jax.ShapeDtypeStruct((M, D), jnp.float32),
        grid=(M // tm,),
        in_specs=[pl.BlockSpec((tm, D), lambda i: (i, 0)),
                  pl.BlockSpec((1, D), lambda i: (0, 0)),
                  pl.BlockSpec((1, D), lambda i: (0, 0))],
        out_specs=pl.BlockSpec((tm, D), lambda i: (i, 0)),
        compiler_params=pltpu.CompilerParams(dimension_semantics=("parallel",)),
    )(x2d, g.reshape(1, D), b.reshape(1, D))


def pallas_attention(q, k, v, *, nhead, causal):
    """q: [B, Sq, D], k/v: [B, Skv, D] -> [B, Sq, D]  (no HBM transposes)."""
    B, Sq, D = q.shape
    Skv = k.shape[1]
    Dh = D // nhead
    scale = 1.0 / math.sqrt(Dh)
    # free (contiguous) reshapes only — head split happens on the minor dim.
    q4 = q.reshape(B, Sq, nhead, Dh).astype(jnp.bfloat16)
    k4 = k.reshape(B, Skv, nhead, Dh).astype(jnp.bfloat16)
    v4 = v.reshape(B, Skv, nhead, Dh).astype(jnp.bfloat16)
    kern = functools.partial(_attention_kernel, scale=scale, causal=causal)
    out = pl.pallas_call(
        kern,
        out_shape=jax.ShapeDtypeStruct((B, Sq, nhead, Dh), jnp.float32),
        grid=(B,),
        in_specs=[pl.BlockSpec((1, Sq, nhead, Dh), lambda b: (b, 0, 0, 0)),
                  pl.BlockSpec((1, Skv, nhead, Dh), lambda b: (b, 0, 0, 0)),
                  pl.BlockSpec((1, Skv, nhead, Dh), lambda b: (b, 0, 0, 0))],
        out_specs=pl.BlockSpec((1, Sq, nhead, Dh), lambda b: (b, 0, 0, 0)),
        compiler_params=pltpu.CompilerParams(dimension_semantics=("parallel",)),
    )(q4, k4, v4)
    # TODO(synk): for long sequences add a KV-axis grid with online softmax
    # (flash-style) so the (Sq, Skv) score tile never has to be fully resident.
    return out.reshape(B, Sq, D)


# ----------------------------- model pieces -----------------------------

def self_attention(x, p, nhead):
    B, S, D = x.shape
    qkv = pallas_matmul(x.reshape(-1, D), p['w_qkv'], p['b_qkv'])   # fused QKV
    q, k, v = jnp.split(qkv.reshape(B, S, 3 * D), 3, axis=-1)
    o = pallas_attention(q, k, v, nhead=nhead, causal=True)
    return pallas_matmul(o.reshape(-1, D), p['wo'], p['bo']).reshape(B, S, D)


def cross_attention(x, mem, p, nhead):
    B, S, D = x.shape
    Mlen = mem.shape[1]
    q = pallas_matmul(x.reshape(-1, D), p['wq'], p['bq']).reshape(B, S, D)
    kv = pallas_matmul(mem.reshape(-1, D), p['w_kv'], p['b_kv'])    # fused KV
    k, v = jnp.split(kv.reshape(B, Mlen, 2 * D), 2, axis=-1)
    o = pallas_attention(q, k, v, nhead=nhead, causal=False)        # no memory mask
    return pallas_matmul(o.reshape(-1, D), p['wo'], p['bo']).reshape(B, S, D)


def decoder_layer(x, mem, p, nhead):
    # PyTorch-style post-norm decoder layer (self-attn -> cross-attn -> FFN).
    B, S, D = x.shape
    sa = self_attention(x, p['self_attn'], nhead)
    x = pallas_layernorm((x + sa).reshape(-1, D), p['ln1_g'], p['ln1_b']).reshape(B, S, D)
    ca = cross_attention(x, mem, p['cross_attn'], nhead)
    x = pallas_layernorm((x + ca).reshape(-1, D), p['ln2_g'], p['ln2_b']).reshape(B, S, D)
    h = pallas_matmul(x.reshape(-1, D), p['ff_w1'], p['ff_b1'], activation="relu")
    h = pallas_matmul(h, p['ff_w2'], p['ff_b2'])
    x = pallas_layernorm(x.reshape(-1, D) + h, p['ln3_g'], p['ln3_b']).reshape(B, S, D)
    return x


def sinusoidal_pe(S, D):
    pos = jnp.arange(S, dtype=jnp.float32)[:, None]
    div = jnp.exp(jnp.arange(0, D, 2, dtype=jnp.float32) * (-jnp.log(10000.0) / D))
    pe = jnp.zeros((S, D), jnp.float32)
    pe = pe.at[:, 0::2].set(jnp.sin(pos * div))
    pe = pe.at[:, 1::2].set(jnp.cos(pos * div))
    return pe


def text_decoder_forward(params, input_ids, encoder_hidden_states, nhead):
    E = params['embedding']                       # [V, D]
    B, S = input_ids.shape
    D = E.shape[1]
    x = jnp.take(E, input_ids, axis=0)            # embedding lookup (XLA glue)
    x = x + sinusoidal_pe(S, D)[None, :, :]       # positional encoding (dropout = eval no-op)
    for lp in params['layers']:
        x = decoder_layer(x, encoder_hidden_states, lp, nhead)
    # Tied LM head: logits = x @ E.T + b — contract D dims directly (no E.T copy),
    # vocab dimension tiled by the matmul grid.
    logits = pallas_matmul(x.reshape(-1, D), E, params['readout_b'], trans_b=True)
    return logits.reshape(B, S, -1)


# ----------------------------- parameter init -----------------------------

def init_params(key, vocab, d_model, nhead, num_layers):
    d_ff = 4 * d_model
    keys = iter(jax.random.split(key, 512))

    def w(shape, scale=0.02):
        return (scale * jax.random.normal(next(keys), shape)).astype(jnp.float32)

    def zeros(n):
        return jnp.zeros((n,), jnp.float32)

    def ones(n):
        return jnp.ones((n,), jnp.float32)

    def self_attn_params():
        return dict(w_qkv=w((d_model, 3 * d_model)), b_qkv=zeros(3 * d_model),
                    wo=w((d_model, d_model)), bo=zeros(d_model))

    def cross_attn_params():
        return dict(wq=w((d_model, d_model)), bq=zeros(d_model),
                    w_kv=w((d_model, 2 * d_model)), b_kv=zeros(2 * d_model),
                    wo=w((d_model, d_model)), bo=zeros(d_model))

    layers = []
    for _ in range(num_layers):
        layers.append(dict(
            self_attn=self_attn_params(), cross_attn=cross_attn_params(),
            ln1_g=ones(d_model), ln1_b=zeros(d_model),
            ln2_g=ones(d_model), ln2_b=zeros(d_model),
            ln3_g=ones(d_model), ln3_b=zeros(d_model),
            ff_w1=w((d_model, d_ff)), ff_b1=zeros(d_ff),
            ff_w2=w((d_ff, d_model)), ff_b2=zeros(d_model)))

    return dict(embedding=w((vocab, d_model)),
                readout_b=zeros(vocab),
                layers=layers)


# ----------------------------- main -----------------------------

if __name__ == "__main__":
    # small config consistent with the module: d_model, nhead, num_layers, vocab
    D_MODEL, NHEAD, NUM_LAYERS, VOCAB = 32, 4, 2, 64
    B, S, MEM = 2, 8, 16

    key = jax.random.PRNGKey(0)
    kp, kid, kmem = jax.random.split(key, 3)

    params = init_params(kp, VOCAB, D_MODEL, NHEAD, NUM_LAYERS)
    input_ids = jax.random.randint(kid, (B, S), 0, VOCAB, dtype=jnp.int32)
    encoder_hidden_states = jax.random.normal(kmem, (B, MEM, D_MODEL), jnp.float32)

    fwd = jax.jit(functools.partial(text_decoder_forward, nhead=NHEAD))
    logits = fwd(params, input_ids, encoder_hidden_states)
    logits = jax.block_until_ready(logits)
    assert logits.shape == (B, S, VOCAB)
    assert bool(jnp.all(jnp.isfinite(logits)))
    print("KERNEL_OK")
</pallas_src>

<mosaic_0001>
module attributes {stable_mosaic.version = 11 : i64} {
  func.func @_mm_kernel(%arg0: i32, %arg1: i32, %arg2: i32, %arg3: memref<16x32xbf16, #tpu.memory_space<vmem>>, %arg4: memref<32x96xbf16, #tpu.memory_space<vmem>>, %arg5: memref<1x96xf32, #tpu.memory_space<vmem>>, %arg6: memref<16x96xf32, #tpu.memory_space<vmem>>, %arg7: memref<16x96xf32, #tpu.memory_space<vmem>>) attributes {dimension_semantics = [#tpu.dimension_semantics<parallel>, #tpu.dimension_semantics<parallel>, #tpu.dimension_semantics<arbitrary>], iteration_bounds = array<i64: 1, 1, 1>, scalar_prefetch = 0 : i64, scratch_operands = 1 : i64, tpu.core_type = #tpu.core_type<tc>, window_params = [{transform_indices = @transform_0, window_bounds = array<i64: 16, 32>}, {transform_indices = @transform_1, window_bounds = array<i64: 32, 96>}, {transform_indices = @transform_2, window_bounds = array<i64: 1, 96>}, {transform_indices = @transform_3, window_bounds = array<i64: 16, 96>}]} {
    %c0_i32 = arith.constant 0 : i32
    %0 = arith.cmpi eq, %arg2, %c0_i32 : i32
    %1 = arith.extui %0 : i1 to i32
    %c0_i32_0 = arith.constant 0 : i32
    %2 = arith.cmpi ne, %1, %c0_i32_0 : i32
    scf.if %2 {
      %cst_10 = arith.constant 0.000000e+00 : f32
      %12 = vector.broadcast %cst_10 : f32 to vector<16x96xf32>
      %c0_11 = arith.constant 0 : index
      %c0_12 = arith.constant 0 : index
      %13 = vector.load %arg7[%c0_11, %c0_12] : memref<16x96xf32, #tpu.memory_space<vmem>>, vector<16x96xf32>
      tpu.vector_store %arg7[%c0_11, %c0_12], %12 {strides = array<i32>} : memref<16x96xf32, #tpu.memory_space<vmem>>, vector<16x96xf32>,
    } else {
    }
    %c0 = arith.constant 0 : index
    %c0_1 = arith.constant 0 : index
    %3 = vector.load %arg7[%c0, %c0_1] : memref<16x96xf32, #tpu.memory_space<vmem>>, vector<16x96xf32>
    %c0_2 = arith.constant 0 : index
    %c0_3 = arith.constant 0 : index
    %4 = vector.load %arg3[%c0_2, %c0_3] : memref<16x32xbf16, #tpu.memory_space<vmem>>, vector<16x32xbf16>
    %c0_4 = arith.constant 0 : index
    %c0_5 = arith.constant 0 : index
    %5 = vector.load %arg4[%c0_4, %c0_5] : memref<32x96xbf16, #tpu.memory_space<vmem>>, vector<32x96xbf16>
    %cst = arith.constant dense<0.000000e+00> : vector<16x96xf32>
    %6 = tpu.matmul %4, %5, %cst {dimension_numbers = #tpu.dot_dimension_numbers<[1], [0], [0], [1], [0, 0, 1, 1], [], []>} : vector<16x32xbf16>, vector<32x96xbf16>, vector<16x96xf32> -> vector<16x96xf32>
    %7 = arith.addf %3, %6 : vector<16x96xf32>
    %c0_6 = arith.constant 0 : index
    %c0_7 = arith.constant 0 : index
    %8 = vector.load %arg7[%c0_6, %c0_7] : memref<16x96xf32, #tpu.memory_space<vmem>>, vector<16x96xf32>
    tpu.vector_store %arg7[%c0_6, %c0_7], %7 {strides = array<i32>} : memref<16x96xf32, #tpu.memory_space<vmem>>, vector<16x96xf32>,
    %c0_i32_8 = arith.constant 0 : i32
    %9 = arith.cmpi eq, %arg2, %c0_i32_8 : i32
    %10 = arith.extui %9 : i1 to i32
    %c0_i32_9 = arith.constant 0 : i32
    %11 = arith.cmpi ne, %10, %c0_i32_9 : i32
    scf.if %11 {
      %c0_10 = arith.constant 0 : index
      %c0_11 = arith.constant 0 : index
      %12 = vector.load %arg7[%c0_10, %c0_11] : memref<16x96xf32, #tpu.memory_space<vmem>>, vector<16x96xf32>
      %c0_12 = arith.constant 0 : index
      %c0_13 = arith.constant 0 : index
      %13 = vector.load %arg5[%c0_12, %c0_13] : memref<1x96xf32, #tpu.memory_space<vmem>>, vector<1x96xf32>
      %14 = vector.broadcast %13 : vector<1x96xf32> to vector<16x96xf32>
      %15 = arith.addf %12, %14 : vector<16x96xf32>
      %c0_14 = arith.constant 0 : index
      %c0_15 = arith.constant 0 : index
      %16 = vector.load %arg6[%c0_14, %c0_15] : memref<16x96xf32, #tpu.memory_space<vmem>>, vector<16x96xf32>
      tpu.vector_store %arg6[%c0_14, %c0_15], %15 {strides = array<i32>} : memref<16x96xf32, #tpu.memory_space<vmem>>, vector<16x96xf32>,
    } else {
    }
    return
  }
  func.func @transform_0(%arg0: i32, %arg1: i32, %arg2: i32) -> (i32, i32) {
    %c0_i32 = arith.constant 0 : i32
    return %arg0, %arg2 : i32, i32
  }
  func.func @transform_1(%arg0: i32, %arg1: i32, %arg2: i32) -> (i32, i32) {
    %c0_i32 = arith.constant 0 : i32
    return %arg2, %arg1 : i32, i32
  }
  func.func @transform_2(%arg0: i32, %arg1: i32, %arg2: i32) -> (i32, i32) {
    %c0_i32 = arith.constant 0 : i32
    %c0_i32_0 = arith.constant 0 : i32
    return %c0_i32, %arg1 : i32, i32
  }
  func.func @transform_3(%arg0: i32, %arg1: i32, %arg2: i32) -> (i32, i32) {
    %c0_i32 = arith.constant 0 : i32
    return %arg0, %arg1 : i32, i32
  }
}

module attributes {stable_mosaic.version = 11 : i64} {
  func.func @_attention_kernel(%arg0: i32, %arg1: memref<1x8x4x8xbf16, #tpu.memory_space<vmem>>, %arg2: memref<1x8x4x8xbf16, #tpu.memory_space<vmem>>, %arg3: memref<1x8x4x8xbf16, #tpu.memory_space<vmem>>, %arg4: memref<1x8x4x8xf32, #tpu.memory_space<vmem>>) attributes {dimension_semantics = [#tpu.dimension_semantics<parallel>], iteration_bounds = array<i64: 2>, scalar_prefetch = 0 : i64, scratch_operands = 0 : i64, tpu.core_type = #tpu.core_type<tc>, window_params = [{transform_indices = @transform_0, window_bounds = array<i64: 1, 8, 4, 8>}, {transform_indices = @transform_1, window_bounds = array<i64: 1, 8, 4, 8>}, {transform_indices = @transform_2, window_bounds = array<i64: 1, 8, 4, 8>}, {transform_indices = @transform_3, window_bounds = array<i64: 1, 8, 4, 8>}]} {
    %c0 = arith.constant 0 : index
    %c0_0 = arith.constant 0 : index
    %c0_1 = arith.constant 0 : index
    %c0_2 = arith.constant 0 : index
    %0 = vector.load %arg1[%c0, %c0_0, %c0_1, %c0_2] : memref<1x8x4x8xbf16, #tpu.memory_space<vmem>>, vector<1x8x4x8xbf16>
    %1 = vector.shape_cast %0 : vector<1x8x4x8xbf16> to vector<8x4x8xbf16>
    %c0_3 = arith.constant 0 : index
    %c0_4 = arith.constant 0 : index
    %c0_5 = arith.constant 0 : index
    %c0_6 = arith.constant 0 : index
    %2 = vector.load %arg2[%c0_3, %c0_4, %c0_5, %c0_6] : memref<1x8x4x8xbf16, #tpu.memory_space<vmem>>, vector<1x8x4x8xbf16>
    %3 = vector.shape_cast %2 : vector<1x8x4x8xbf16> to vector<8x4x8xbf16>
    %c0_7 = arith.constant 0 : index
    %c0_8 = arith.constant 0 : index
    %c0_9 = arith.constant 0 : index
    %c0_10 = arith.constant 0 : index
    %4 = vector.load %arg3[%c0_7, %c0_8, %c0_9, %c0_10] : memref<1x8x4x8xbf16, #tpu.memory_space<vmem>>, vector<1x8x4x8xbf16>
    %5 = vector.shape_cast %4 : vector<1x8x4x8xbf16> to vector<8x4x8xbf16>
    "tpu.trace_start"() <{level = 10 : i32, message = "qhd,khd->hqk"}> : () -> ()
    %cst = arith.constant dense<0.000000e+00> : vector<4x8x8xf32>
    %6 = tpu.matmul %1, %3, %cst {dimension_numbers = #tpu.dot_dimension_numbers<[2], [2], [0], [0], [0, 1, 0, 0, 1, 0], [1], [1]>} : vector<8x4x8xbf16>, vector<8x4x8xbf16>, vector<4x8x8xf32> -> vector<4x8x8xf32>
    "tpu.trace_stop"() : () -> ()
    %cst_11 = arith.constant 0.353553385 : f32
    %7 = vector.broadcast %cst_11 : f32 to vector<4x8x8xf32>
    %8 = arith.mulf %6, %7 : vector<4x8x8xf32>
    %9 = tpu.iota {dimensions = array<i32: 1>} : vector<4x8x8xi32>
    %10 = tpu.iota {dimensions = array<i32: 2>} : vector<4x8x8xi32>
    %11 = arith.cmpi sgt, %10, %9 : vector<4x8x8xi32>
    %cst_12 = arith.constant -1.000000e+30 : f32
    %12 = vector.broadcast %cst_12 : f32 to vector<4x8x8xf32>
    %13 = arith.select %11, %12, %8 : vector<4x8x8xi1>, vector<4x8x8xf32>
    %cst_13 = arith.constant dense<0xFF800000> : vector<4x8xf32>
    %14 = vector.multi_reduction <maximumf>, %13, %cst_13 [2] : vector<4x8x8xf32> to vector<4x8xf32>
    %15 = vector.shape_cast %14 : vector<4x8xf32> to vector<4x8x1xf32>
    %16 = vector.broadcast %15 : vector<4x8x1xf32> to vector<4x8x8xf32>
    %17 = arith.subf %13, %16 : vector<4x8x8xf32>
    %18 = math.exp %17 : vector<4x8x8xf32>
    %cst_14 = arith.constant dense<0.000000e+00> : vector<4x8xf32>
    %19 = vector.multi_reduction <add>, %18, %cst_14 [2] : vector<4x8x8xf32> to vector<4x8xf32>
    %20 = vector.shape_cast %19 : vector<4x8xf32> to vector<4x8x1xf32>
    %21 = arith.truncf %18 : vector<4x8x8xf32> to vector<4x8x8xbf16>
    "tpu.trace_start"() <{level = 10 : i32, message = "hqk,khd->hqd"}> : () -> ()
    %cst_15 = arith.constant dense<0.000000e+00> : vector<4x8x8xf32>
    %22 = tpu.matmul %21, %5, %cst_15 {dimension_numbers = #tpu.dot_dimension_numbers<[2], [0], [1], [2], [0, 0, 0, 1, 1, 2], [0], [1]>} : vector<4x8x8xbf16>, vector<8x4x8xbf16>, vector<4x8x8xf32> -> vector<4x8x8xf32>
    "tpu.trace_stop"() : () -> ()
    %23 = tpu.reciprocal %20 {approx = true} : vector<4x8x1xf32> -> vector<4x8x1xf32>
    %24 = vector.broadcast %23 : vector<4x8x1xf32> to vector<4x8x8xf32>
    %25 = arith.mulf %22, %24 : vector<4x8x8xf32>
    %26 = tpu.transpose %25, [1, 0, 2] : vector<4x8x8xf32> -> vector<8x4x8xf32>
    %c0_16 = arith.constant 0 : index
    %c0_17 = arith.constant 0 : index
    %c0_18 = arith.constant 0 : index
    %c0_19 = arith.constant 0 : index
    %27 = vector.load %arg4[%c0_16, %c0_17, %c0_18, %c0_19] : memref<1x8x4x8xf32, #tpu.memory_space<vmem>>, vector<1x8x4x8xf32>
    %28 = vector.shape_cast %27 : vector<1x8x4x8xf32> to vector<8x4x8xf32>
    %29 = vector.shape_cast %26 : vector<8x4x8xf32> to vector<1x8x4x8xf32>
    tpu.vector_store %arg4[%c0_16, %c0_17, %c0_18, %c0_19], %29 {strides = array<i32>} : memref<1x8x4x8xf32, #tpu.memory_space<vmem>>, vector<1x8x4x8xf32>,
    return
  }
  func.func @transform_0(%arg0: i32) -> (i32, i32, i32, i32) {
    %c0_i32 = arith.constant 0 : i32
    %c0_i32_0 = arith.constant 0 : i32
    %c0_i32_1 = arith.constant 0 : i32
    %c0_i32_2 = arith.constant 0 : i32
    return %arg0, %c0_i32, %c0_i32_0, %c0_i32_1 : i32, i32, i32, i32
  }
  func.func @transform_1(%arg0: i32) -> (i32, i32, i32, i32) {
    %c0_i32 = arith.constant 0 : i32
    %c0_i32_0 = arith.constant 0 : i32
    %c0_i32_1 = arith.constant 0 : i32
    %c0_i32_2 = arith.constant 0 : i32
    return %arg0, %c0_i32, %c0_i32_0, %c0_i32_1 : i32, i32, i32, i32
  }
  func.func @transform_2(%arg0: i32) -> (i32, i32, i32, i32) {
    %c0_i32 = arith.constant 0 : i32
    %c0_i32_0 = arith.constant 0 : i32
    %c0_i32_1 = arith.constant 0 : i32
    %c0_i32_2 = arith.constant 0 : i32
    return %arg0, %c0_i32, %c0_i32_0, %c0_i32_1 : i32, i32, i32, i32
  }
  func.func @transform_3(%arg0: i32) -> (i32, i32, i32, i32) {
    %c0_i32 = arith.constant 0 : i32
    %c0_i32_0 = arith.constant 0 : i32
    %c0_i32_1 = arith.constant 0 : i32
    %c0_i32_2 = arith.constant 0 : i32
    return %arg0, %c0_i32, %c0_i32_0, %c0_i32_1 : i32, i32, i32, i32
  }
}

module attributes {stable_mosaic.version = 11 : i64} {
  func.func @_mm_kernel(%arg0: i32, %arg1: i32, %arg2: i32, %arg3: memref<16x32xbf16, #tpu.memory_space<vmem>>, %arg4: memref<32x32xbf16, #tpu.memory_space<vmem>>, %arg5: memref<1x32xf32, #tpu.memory_space<vmem>>, %arg6: memref<16x32xf32, #tpu.memory_space<vmem>>, %arg7: memref<16x32xf32, #tpu.memory_space<vmem>>) attributes {dimension_semantics = [#tpu.dimension_semantics<parallel>, #tpu.dimension_semantics<parallel>, #tpu.dimension_semantics<arbitrary>], iteration_bounds = array<i64: 1, 1, 1>, scalar_prefetch = 0 : i64, scratch_operands = 1 : i64, tpu.core_type = #tpu.core_type<tc>, window_params = [{transform_indices = @transform_0, window_bounds = array<i64: 16, 32>}, {transform_indices = @transform_1, window_bounds = array<i64: 32, 32>}, {transform_indices = @transform_2, window_bounds = array<i64: 1, 32>}, {transform_indices = @transform_3, window_bounds = array<i64: 16, 32>}]} {
    %c0_i32 = arith.constant 0 : i32
    %0 = arith.cmpi eq, %arg2, %c0_i32 : i32
    %1 = arith.extui %0 : i1 to i32
    %c0_i32_0 = arith.constant 0 : i32
    %2 = arith.cmpi ne, %1, %c0_i32_0 : i32
    scf.if %2 {
      %cst_10 = arith.constant 0.000000e+00 : f32
      %12 = vector.broadcast %cst_10 : f32 to vector<16x32xf32>
      %c0_11 = arith.constant 0 : index
      %c0_12 = arith.constant 0 : index
      %13 = vector.load %arg7[%c0_11, %c0_12] : memref<16x32xf32, #tpu.memory_space<vmem>>, vector<16x32xf32>
      tpu.vector_store %arg7[%c0_11, %c0_12], %12 {strides = array<i32>} : memref<16x32xf32, #tpu.memory_space<vmem>>, vector<16x32xf32>,
    } else {
    }
    %c0 = arith.constant 0 : index
    %c0_1 = arith.constant 0 : index
    %3 = vector.load %arg7[%c0, %c0_1] : memref<16x32xf32, #tpu.memory_space<vmem>>, vector<16x32xf32>
    %c0_2 = arith.constant 0 : index
    %c0_3 = arith.constant 0 : index
    %4 = vector.load %arg3[%c0_2, %c0_3] : memref<16x32xbf16, #tpu.memory_space<vmem>>, vector<16x32xbf16>
    %c0_4 = arith.constant 0 : index
    %c0_5 = arith.constant 0 : index
    %5 = vector.load %arg4[%c0_4, %c0_5] : memref<32x32xbf16, #tpu.memory_space<vmem>>, vector<32x32xbf16>
    %cst = arith.constant dense<0.000000e+00> : vector<16x32xf32>
    %6 = tpu.matmul %4, %5, %cst {dimension_numbers = #tpu.dot_dimension_numbers<[1], [0], [0], [1], [0, 0, 1, 1], [], []>} : vector<16x32xbf16>, vector<32x32xbf16>, vector<16x32xf32> -> vector<16x32xf32>
    %7 = arith.addf %3, %6 : vector<16x32xf32>
    %c0_6 = arith.constant 0 : index
    %c0_7 = arith.constant 0 : index
    %8 = vector.load %arg7[%c0_6, %c0_7] : memref<16x32xf32, #tpu.memory_space<vmem>>, vector<16x32xf32>
    tpu.vector_store %arg7[%c0_6, %c0_7], %7 {strides = array<i32>} : memref<16x32xf32, #tpu.memory_space<vmem>>, vector<16x32xf32>,
    %c0_i32_8 = arith.constant 0 : i32
    %9 = arith.cmpi eq, %arg2, %c0_i32_8 : i32
    %10 = arith.extui %9 : i1 to i32
    %c0_i32_9 = arith.constant 0 : i32
    %11 = arith.cmpi ne, %10, %c0_i32_9 : i32
    scf.if %11 {
      %c0_10 = arith.constant 0 : index
      %c0_11 = arith.constant 0 : index
      %12 = vector.load %arg7[%c0_10, %c0_11] : memref<16x32xf32, #tpu.memory_space<vmem>>, vector<16x32xf32>
      %c0_12 = arith.constant 0 : index
      %c0_13 = arith.constant 0 : index
      %13 = vector.load %arg5[%c0_12, %c0_13] : memref<1x32xf32, #tpu.memory_space<vmem>>, vector<1x32xf32>
      %14 = vector.broadcast %13 : vector<1x32xf32> to vector<16x32xf32>
      %15 = arith.addf %12, %14 : vector<16x32xf32>
      %c0_14 = arith.constant 0 : index
      %c0_15 = arith.constant 0 : index
      %16 = vector.load %arg6[%c0_14, %c0_15] : memref<16x32xf32, #tpu.memory_space<vmem>>, vector<16x32xf32>
      tpu.vector_store %arg6[%c0_14, %c0_15], %15 {strides = array<i32>} : memref<16x32xf32, #tpu.memory_space<vmem>>, vector<16x32xf32>,
    } else {
    }
    return
  }
  func.func @transform_0(%arg0: i32, %arg1: i32, %arg2: i32) -> (i32, i32) {
    %c0_i32 = arith.constant 0 : i32
    return %arg0, %arg2 : i32, i32
  }
  func.func @transform_1(%arg0: i32, %arg1: i32, %arg2: i32) -> (i32, i32) {
    %c0_i32 = arith.constant 0 : i32
    return %arg2, %arg1 : i32, i32
  }
  func.func @transform_2(%arg0: i32, %arg1: i32, %arg2: i32) -> (i32, i32) {
    %c0_i32 = arith.constant 0 : i32
    %c0_i32_0 = arith.constant 0 : i32
    return %c0_i32, %arg1 : i32, i32
  }
  func.func @transform_3(%arg0: i32, %arg1: i32, %arg2: i32) -> (i32, i32) {
    %c0_i32 = arith.constant 0 : i32
    return %arg0, %arg1 : i32, i32
  }
}

module attributes {stable_mosaic.version = 11 : i64} {
  func.func @_layernorm_kernel(%arg0: i32, %arg1: memref<16x32xf32, #tpu.memory_space<vmem>>, %arg2: memref<1x32xf32, #tpu.memory_space<vmem>>, %arg3: memref<1x32xf32, #tpu.memory_space<vmem>>, %arg4: memref<16x32xf32, #tpu.memory_space<vmem>>) attributes {dimension_semantics = [#tpu.dimension_semantics<parallel>], iteration_bounds = array<i64: 1>, scalar_prefetch = 0 : i64, scratch_operands = 0 : i64, tpu.core_type = #tpu.core_type<tc>, window_params = [{transform_indices = @transform_0, window_bounds = array<i64: 16, 32>}, {pipeline_mode = #tpu.pipeline_mode<synchronous>, transform_indices = @transform_1, window_bounds = array<i64: 1, 32>}, {pipeline_mode = #tpu.pipeline_mode<synchronous>, transform_indices = @transform_2, window_bounds = array<i64: 1, 32>}, {transform_indices = @transform_3, window_bounds = array<i64: 16, 32>}]} {
    %c0 = arith.constant 0 : index
    %c0_0 = arith.constant 0 : index
    %0 = vector.load %arg1[%c0, %c0_0] : memref<16x32xf32, #tpu.memory_space<vmem>>, vector<16x32xf32>
    %cst = arith.constant dense<0.000000e+00> : vector<16xf32>
    %1 = vector.multi_reduction <add>, %0, %cst [1] : vector<16x32xf32> to vector<16xf32>
    %2 = vector.shape_cast %1 : vector<16xf32> to vector<16x1xf32>
    %cst_1 = arith.constant 3.200000e+01 : f32
    %3 = vector.broadcast %cst_1 : f32 to vector<16x1xf32>
    %4 = arith.divf %2, %3 : vector<16x1xf32>
    %5 = vector.broadcast %4 : vector<16x1xf32> to vector<16x32xf32>
    %6 = arith.subf %0, %5 : vector<16x32xf32>
    %7 = arith.mulf %6, %6 : vector<16x32xf32>
    %cst_2 = arith.constant dense<0.000000e+00> : vector<16xf32>
    %8 = vector.multi_reduction <add>, %7, %cst_2 [1] : vector<16x32xf32> to vector<16xf32>
    %9 = vector.shape_cast %8 : vector<16xf32> to vector<16x1xf32>
    %cst_3 = arith.constant 3.200000e+01 : f32
    %10 = vector.broadcast %cst_3 : f32 to vector<16x1xf32>
    %11 = arith.divf %9, %10 : vector<16x1xf32>
    %12 = vector.broadcast %4 : vector<16x1xf32> to vector<16x32xf32>
    %13 = arith.subf %0, %12 : vector<16x32xf32>
    %cst_4 = arith.constant 9.99999974E-6 : f32
    %14 = vector.broadcast %cst_4 : f32 to vector<16x1xf32>
    %15 = arith.addf %11, %14 : vector<16x1xf32>
    %16 = math.rsqrt %15 : vector<16x1xf32>
    %17 = vector.broadcast %16 : vector<16x1xf32> to vector<16x32xf32>
    %18 = arith.mulf %13, %17 : vector<16x32xf32>
    %c0_5 = arith.constant 0 : index
    %c0_6 = arith.constant 0 : index
    %19 = vector.load %arg2[%c0_5, %c0_6] : memref<1x32xf32, #tpu.memory_space<vmem>>, vector<1x32xf32>
    %20 = vector.broadcast %19 : vector<1x32xf32> to vector<16x32xf32>
    %21 = arith.mulf %18, %20 : vector<16x32xf32>
    %c0_7 = arith.constant 0 : index
    %c0_8 = arith.constant 0 : index
    %22 = vector.load %arg3[%c0_7, %c0_8] : memref<1x32xf32, #tpu.memory_space<vmem>>, vector<1x32xf32>
    %23 = vector.broadcast %22 : vector<1x32xf32> to vector<16x32xf32>
    %24 = arith.addf %21, %23 : vector<16x32xf32>
    %c0_9 = arith.constant 0 : index
    %c0_10 = arith.constant 0 : index
    %25 = vector.load %arg4[%c0_9, %c0_10] : memref<16x32xf32, #tpu.memory_space<vmem>>, vector<16x32xf32>
    tpu.vector_store %arg4[%c0_9, %c0_10], %24 {strides = array<i32>} : memref<16x32xf32, #tpu.memory_space<vmem>>, vector<16x32xf32>,
    return
  }
  func.func @transform_0(%arg0: i32) -> (i32, i32) {
    %c0_i32 = arith.constant 0 : i32
    %c0_i32_0 = arith.constant 0 : i32
    return %arg0, %c0_i32 : i32, i32
  }
  func.func @transform_1(%arg0: i32) -> (i32, i32) {
    %c0_i32 = arith.constant 0 : i32
    %c0_i32_0 = arith.constant 0 : i32
    %c0_i32_1 = arith.constant 0 : i32
    return %c0_i32, %c0_i32_0 : i32, i32
  }
  func.func @transform_2(%arg0: i32) -> (i32, i32) {
    %c0_i32 = arith.constant 0 : i32
    %c0_i32_0 = arith.constant 0 : i32
    %c0_i32_1 = arith.constant 0 : i32
    return %c0_i32, %c0_i32_0 : i32, i32
  }
  func.func @transform_3(%arg0: i32) -> (i32, i32) {
    %c0_i32 = arith.constant 0 : i32
    %c0_i32_0 = arith.constant 0 : i32
    return %arg0, %c0_i32 : i32, i32
  }
}

module attributes {stable_mosaic.version = 11 : i64} {
  func.func @_mm_kernel(%arg0: i32, %arg1: i32, %arg2: i32, %arg3: memref<32x32xbf16, #tpu.memory_space<vmem>>, %arg4: memref<32x64xbf16, #tpu.memory_space<vmem>>, %arg5: memref<1x64xf32, #tpu.memory_space<vmem>>, %arg6: memref<32x64xf32, #tpu.memory_space<vmem>>, %arg7: memref<32x64xf32, #tpu.memory_space<vmem>>) attributes {dimension_semantics = [#tpu.dimension_semantics<parallel>, #tpu.dimension_semantics<parallel>, #tpu.dimension_semantics<arbitrary>], iteration_bounds = array<i64: 1, 1, 1>, scalar_prefetch = 0 : i64, scratch_operands = 1 : i64, tpu.core_type = #tpu.core_type<tc>, window_params = [{transform_indices = @transform_0, window_bounds = array<i64: 32, 32>}, {transform_indices = @transform_1, window_bounds = array<i64: 32, 64>}, {transform_indices = @transform_2, window_bounds = array<i64: 1, 64>}, {transform_indices = @transform_3, window_bounds = array<i64: 32, 64>}]} {
    %c0_i32 = arith.constant 0 : i32
    %0 = arith.cmpi eq, %arg2, %c0_i32 : i32
    %1 = arith.extui %0 : i1 to i32
    %c0_i32_0 = arith.constant 0 : i32
    %2 = arith.cmpi ne, %1, %c0_i32_0 : i32
    scf.if %2 {
      %cst_10 = arith.constant 0.000000e+00 : f32
      %12 = vector.broadcast %cst_10 : f32 to vector<32x64xf32>
      %c0_11 = arith.constant 0 : index
      %c0_12 = arith.constant 0 : index
      %13 = vector.load %arg7[%c0_11, %c0_12] : memref<32x64xf32, #tpu.memory_space<vmem>>, vector<32x64xf32>
      tpu.vector_store %arg7[%c0_11, %c0_12], %12 {strides = array<i32>} : memref<32x64xf32, #tpu.memory_space<vmem>>, vector<32x64xf32>,
    } else {
    }
    %c0 = arith.constant 0 : index
    %c0_1 = arith.constant 0 : index
    %3 = vector.load %arg7[%c0, %c0_1] : memref<32x64xf32, #tpu.memory_space<vmem>>, vector<32x64xf32>
    %c0_2 = arith.constant 0 : index
    %c0_3 = arith.constant 0 : index
    %4 = vector.load %arg3[%c0_2, %c0_3] : memref<32x32xbf16, #tpu.memory_space<vmem>>, vector<32x32xbf16>
    %c0_4 = arith.constant 0 : index
    %c0_5 = arith.constant 0 : index
    %5 = vector.load %arg4[%c0_4, %c0_5] : memref<32x64xbf16, #tpu.memory_space<vmem>>, vector<32x64xbf16>
    %cst = arith.constant dense<0.000000e+00> : vector<32x64xf32>
    %6 = tpu.matmul %4, %5, %cst {dimension_numbers = #tpu.dot_dimension_numbers<[1], [0], [0], [1], [0, 0, 1, 1], [], []>} : vector<32x32xbf16>, vector<32x64xbf16>, vector<32x64xf32> -> vector<32x64xf32>
    %7 = arith.addf %3, %6 : vector<32x64xf32>
    %c0_6 = arith.constant 0 : index
    %c0_7 = arith.constant 0 : index
    %8 = vector.load %arg7[%c0_6, %c0_7] : memref<32x64xf32, #tpu.memory_space<vmem>>, vector<32x64xf32>
    tpu.vector_store %arg7[%c0_6, %c0_7], %7 {strides = array<i32>} : memref<32x64xf32, #tpu.memory_space<vmem>>, vector<32x64xf32>,
    %c0_i32_8 = arith.constant 0 : i32
    %9 = arith.cmpi eq, %arg2, %c0_i32_8 : i32
    %10 = arith.extui %9 : i1 to i32
    %c0_i32_9 = arith.constant 0 : i32
    %11 = arith.cmpi ne, %10, %c0_i32_9 : i32
    scf.if %11 {
      %c0_10 = arith.constant 0 : index
      %c0_11 = arith.constant 0 : index
      %12 = vector.load %arg7[%c0_10, %c0_11] : memref<32x64xf32, #tpu.memory_space<vmem>>, vector<32x64xf32>
      %c0_12 = arith.constant 0 : index
      %c0_13 = arith.constant 0 : index
      %13 = vector.load %arg5[%c0_12, %c0_13] : memref<1x64xf32, #tpu.memory_space<vmem>>, vector<1x64xf32>
      %14 = vector.broadcast %13 : vector<1x64xf32> to vector<32x64xf32>
      %15 = arith.addf %12, %14 : vector<32x64xf32>
      %c0_14 = arith.constant 0 : index
      %c0_15 = arith.constant 0 : index
      %16 = vector.load %arg6[%c0_14, %c0_15] : memref<32x64xf32, #tpu.memory_space<vmem>>, vector<32x64xf32>
      tpu.vector_store %arg6[%c0_14, %c0_15], %15 {strides = array<i32>} : memref<32x64xf32, #tpu.memory_space<vmem>>, vector<32x64xf32>,
    } else {
    }
    return
  }
  func.func @transform_0(%arg0: i32, %arg1: i32, %arg2: i32) -> (i32, i32) {
    %c0_i32 = arith.constant 0 : i32
    return %arg0, %arg2 : i32, i32
  }
  func.func @transform_1(%arg0: i32, %arg1: i32, %arg2: i32) -> (i32, i32) {
    %c0_i32 = arith.constant 0 : i32
    return %arg2, %arg1 : i32, i32
  }
  func.func @transform_2(%arg0: i32, %arg1: i32, %arg2: i32) -> (i32, i32) {
    %c0_i32 = arith.constant 0 : i32
    %c0_i32_0 = arith.constant 0 : i32
    return %c0_i32, %arg1 : i32, i32
  }
  func.func @transform_3(%arg0: i32, %arg1: i32, %arg2: i32) -> (i32, i32) {
    %c0_i32 = arith.constant 0 : i32
    return %arg0, %arg1 : i32, i32
  }
}

module attributes {stable_mosaic.version = 11 : i64} {
  func.func @_mm_kernel(%arg0: i32, %arg1: i32, %arg2: i32, %arg3: memref<16x32xbf16, #tpu.memory_space<vmem>>, %arg4: memref<32x128xbf16, #tpu.memory_space<vmem>>, %arg5: memref<1x128xf32, #tpu.memory_space<vmem>>, %arg6: memref<16x128xf32, #tpu.memory_space<vmem>>, %arg7: memref<16x128xf32, #tpu.memory_space<vmem>>) attributes {dimension_semantics = [#tpu.dimension_semantics<parallel>, #tpu.dimension_semantics<parallel>, #tpu.dimension_semantics<arbitrary>], iteration_bounds = array<i64: 1, 1, 1>, scalar_prefetch = 0 : i64, scratch_operands = 1 : i64, tpu.core_type = #tpu.core_type<tc>, window_params = [{transform_indices = @transform_0, window_bounds = array<i64: 16, 32>}, {transform_indices = @transform_1, window_bounds = array<i64: 32, 128>}, {transform_indices = @transform_2, window_bounds = array<i64: 1, 128>}, {transform_indices = @transform_3, window_bounds = array<i64: 16, 128>}]} {
    %c0_i32 = arith.constant 0 : i32
    %0 = arith.cmpi eq, %arg2, %c0_i32 : i32
    %1 = arith.extui %0 : i1 to i32
    %c0_i32_0 = arith.constant 0 : i32
    %2 = arith.cmpi ne, %1, %c0_i32_0 : i32
    scf.if %2 {
      %cst_10 = arith.constant 0.000000e+00 : f32
      %12 = vector.broadcast %cst_10 : f32 to vector<16x128xf32>
      %c0_11 = arith.constant 0 : index
      %c0_12 = arith.constant 0 : index
      %13 = vector.load %arg7[%c0_11, %c0_12] : memref<16x128xf32, #tpu.memory_space<vmem>>, vector<16x128xf32>
      tpu.vector_store %arg7[%c0_11, %c0_12], %12 {strides = array<i32>} : memref<16x128xf32, #tpu.memory_space<vmem>>, vector<16x128xf32>,
    } else {
    }
    %c0 = arith.constant 0 : index
    %c0_1 = arith.constant 0 : index
    %3 = vector.load %arg7[%c0, %c0_1] : memref<16x128xf32, #tpu.memory_space<vmem>>, vector<16x128xf32>
    %c0_2 = arith.constant 0 : index
    %c0_3 = arith.constant 0 : index
    %4 = vector.load %arg3[%c0_2, %c0_3] : memref<16x32xbf16, #tpu.memory_space<vmem>>, vector<16x32xbf16>
    %c0_4 = arith.constant 0 : index
    %c0_5 = arith.constant 0 : index
    %5 = vector.load %arg4[%c0_4, %c0_5] : memref<32x128xbf16, #tpu.memory_space<vmem>>, vector<32x128xbf16>
    %cst = arith.constant dense<0.000000e+00> : vector<16x128xf32>
    %6 = tpu.matmul %4, %5, %cst {dimension_numbers = #tpu.dot_dimension_numbers<[1], [0], [0], [1], [0, 0, 1, 1], [], []>} : vector<16x32xbf16>, vector<32x128xbf16>, vector<16x128xf32> -> vector<16x128xf32>
    %7 = arith.addf %3, %6 : vector<16x128xf32>
    %c0_6 = arith.constant 0 : index
    %c0_7 = arith.constant 0 : index
    %8 = vector.load %arg7[%c0_6, %c0_7] : memref<16x128xf32, #tpu.memory_space<vmem>>, vector<16x128xf32>
    tpu.vector_store %arg7[%c0_6, %c0_7], %7 {strides = array<i32>} : memref<16x128xf32, #tpu.memory_space<vmem>>, vector<16x128xf32>,
    %c0_i32_8 = arith.constant 0 : i32
    %9 = arith.cmpi eq, %arg2, %c0_i32_8 : i32
    %10 = arith.extui %9 : i1 to i32
    %c0_i32_9 = arith.constant 0 : i32
    %11 = arith.cmpi ne, %10, %c0_i32_9 : i32
    scf.if %11 {
      %c0_10 = arith.constant 0 : index
      %c0_11 = arith.constant 0 : index
      %12 = vector.load %arg7[%c0_10, %c0_11] : memref<16x128xf32, #tpu.memory_space<vmem>>, vector<16x128xf32>
      %c0_12 = arith.constant 0 : index
      %c0_13 = arith.constant 0 : index
      %13 = vector.load %arg5[%c0_12, %c0_13] : memref<1x128xf32, #tpu.memory_space<vmem>>, vector<1x128xf32>
      %14 = vector.broadcast %13 : vector<1x128xf32> to vector<16x128xf32>
      %15 = arith.addf %12, %14 : vector<16x128xf32>
      %cst_14 = arith.constant 0.000000e+00 : f32
      %16 = vector.broadcast %cst_14 : f32 to vector<16x128xf32>
      %17 = arith.maximumf %15, %16 : vector<16x128xf32>
      %c0_15 = arith.constant 0 : index
      %c0_16 = arith.constant 0 : index
      %18 = vector.load %arg6[%c0_15, %c0_16] : memref<16x128xf32, #tpu.memory_space<vmem>>, vector<16x128xf32>
      tpu.vector_store %arg6[%c0_15, %c0_16], %17 {strides = array<i32>} : memref<16x128xf32, #tpu.memory_space<vmem>>, vector<16x128xf32>,
    } else {
    }
    return
  }
  func.func @transform_0(%arg0: i32, %arg1: i32, %arg2: i32) -> (i32, i32) {
    %c0_i32 = arith.constant 0 : i32
    return %arg0, %arg2 : i32, i32
  }
  func.func @transform_1(%arg0: i32, %arg1: i32, %arg2: i32) -> (i32, i32) {
    %c0_i32 = arith.constant 0 : i32
    return %arg2, %arg1 : i32, i32
  }
  func.func @transform_2(%arg0: i32, %arg1: i32, %arg2: i32) -> (i32, i32) {
    %c0_i32 = arith.constant 0 : i32
    %c0_i32_0 = arith.constant 0 : i32
    return %c0_i32, %arg1 : i32, i32
  }
  func.func @transform_3(%arg0: i32, %arg1: i32, %arg2: i32) -> (i32, i32) {
    %c0_i32 = arith.constant 0 : i32
    return %arg0, %arg1 : i32, i32
  }
}

module attributes {stable_mosaic.version = 11 : i64} {
  func.func @_attention_kernel(%arg0: i32, %arg1: memref<1x8x4x8xbf16, #tpu.memory_space<vmem>>, %arg2: memref<1x16x4x8xbf16, #tpu.memory_space<vmem>>, %arg3: memref<1x16x4x8xbf16, #tpu.memory_space<vmem>>, %arg4: memref<1x8x4x8xf32, #tpu.memory_space<vmem>>) attributes {dimension_semantics = [#tpu.dimension_semantics<parallel>], iteration_bounds = array<i64: 2>, scalar_prefetch = 0 : i64, scratch_operands = 0 : i64, tpu.core_type = #tpu.core_type<tc>, window_params = [{transform_indices = @transform_0, window_bounds = array<i64: 1, 8, 4, 8>}, {transform_indices = @transform_1, window_bounds = array<i64: 1, 16, 4, 8>}, {transform_indices = @transform_2, window_bounds = array<i64: 1, 16, 4, 8>}, {transform_indices = @transform_3, window_bounds = array<i64: 1, 8, 4, 8>}]} {
    %c0 = arith.constant 0 : index
    %c0_0 = arith.constant 0 : index
    %c0_1 = arith.constant 0 : index
    %c0_2 = arith.constant 0 : index
    %0 = vector.load %arg1[%c0, %c0_0, %c0_1, %c0_2] : memref<1x8x4x8xbf16, #tpu.memory_space<vmem>>, vector<1x8x4x8xbf16>
    %1 = vector.shape_cast %0 : vector<1x8x4x8xbf16> to vector<8x4x8xbf16>
    %c0_3 = arith.constant 0 : index
    %c0_4 = arith.constant 0 : index
    %c0_5 = arith.constant 0 : index
    %c0_6 = arith.constant 0 : index
    %2 = vector.load %arg2[%c0_3, %c0_4, %c0_5, %c0_6] : memref<1x16x4x8xbf16, #tpu.memory_space<vmem>>, vector<1x16x4x8xbf16>
    %3 = vector.shape_cast %2 : vector<1x16x4x8xbf16> to vector<16x4x8xbf16>
    %c0_7 = arith.constant 0 : index
    %c0_8 = arith.constant 0 : index
    %c0_9 = arith.constant 0 : index
    %c0_10 = arith.constant 0 : index
    %4 = vector.load %arg3[%c0_7, %c0_8, %c0_9, %c0_10] : memref<1x16x4x8xbf16, #tpu.memory_space<vmem>>, vector<1x16x4x8xbf16>
    %5 = vector.shape_cast %4 : vector<1x16x4x8xbf16> to vector<16x4x8xbf16>
    "tpu.trace_start"() <{level = 10 : i32, message = "qhd,khd->hqk"}> : () -> ()
    %cst = arith.constant dense<0.000000e+00> : vector<4x8x16xf32>
    %6 = tpu.matmul %1, %3, %cst {dimension_numbers = #tpu.dot_dimension_numbers<[2], [2], [0], [0], [0, 1, 0, 0, 1, 0], [1], [1]>} : vector<8x4x8xbf16>, vector<16x4x8xbf16>, vector<4x8x16xf32> -> vector<4x8x16xf32>
    "tpu.trace_stop"() : () -> ()
    %cst_11 = arith.constant 0.353553385 : f32
    %7 = vector.broadcast %cst_11 : f32 to vector<4x8x16xf32>
    %8 = arith.mulf %6, %7 : vector<4x8x16xf32>
    %cst_12 = arith.constant dense<0xFF800000> : vector<4x8xf32>
    %9 = vector.multi_reduction <maximumf>, %8, %cst_12 [2] : vector<4x8x16xf32> to vector<4x8xf32>
    %10 = vector.shape_cast %9 : vector<4x8xf32> to vector<4x8x1xf32>
    %11 = vector.broadcast %10 : vector<4x8x1xf32> to vector<4x8x16xf32>
    %12 = arith.subf %8, %11 : vector<4x8x16xf32>
    %13 = math.exp %12 : vector<4x8x16xf32>
    %cst_13 = arith.constant dense<0.000000e+00> : vector<4x8xf32>
    %14 = vector.multi_reduction <add>, %13, %cst_13 [2] : vector<4x8x16xf32> to vector<4x8xf32>
    %15 = vector.shape_cast %14 : vector<4x8xf32> to vector<4x8x1xf32>
    %16 = arith.truncf %13 : vector<4x8x16xf32> to vector<4x8x16xbf16>
    "tpu.trace_start"() <{level = 10 : i32, message = "hqk,khd->hqd"}> : () -> ()
    %cst_14 = arith.constant dense<0.000000e+00> : vector<4x8x8xf32>
    %17 = tpu.matmul %16, %5, %cst_14 {dimension_numbers = #tpu.dot_dimension_numbers<[2], [0], [1], [2], [0, 0, 0, 1, 1, 2], [0], [1]>} : vector<4x8x16xbf16>, vector<16x4x8xbf16>, vector<4x8x8xf32> -> vector<4x8x8xf32>
    "tpu.trace_stop"() : () -> ()
    %18 = tpu.reciprocal %15 {approx = true} : vector<4x8x1xf32> -> vector<4x8x1xf32>
    %19 = vector.broadcast %18 : vector<4x8x1xf32> to vector<4x8x8xf32>
    %20 = arith.mulf %17, %19 : vector<4x8x8xf32>
    %21 = tpu.transpose %20, [1, 0, 2] : vector<4x8x8xf32> -> vector<8x4x8xf32>
    %c0_15 = arith.constant 0 : index
    %c0_16 = arith.constant 0 : index
    %c0_17 = arith.constant 0 : index
    %c0_18 = arith.constant 0 : index
    %22 = vector.load %arg4[%c0_15, %c0_16, %c0_17, %c0_18] : memref<1x8x4x8xf32, #tpu.memory_space<vmem>>, vector<1x8x4x8xf32>
    %23 = vector.shape_cast %22 : vector<1x8x4x8xf32> to vector<8x4x8xf32>
    %24 = vector.shape_cast %21 : vector<8x4x8xf32> to vector<1x8x4x8xf32>
    tpu.vector_store %arg4[%c0_15, %c0_16, %c0_17, %c0_18], %24 {strides = array<i32>} : memref<1x8x4x8xf32, #tpu.memory_space<vmem>>, vector<1x8x4x8xf32>,
    return
  }
  func.func @transform_0(%arg0: i32) -> (i32, i32, i32, i32) {
    %c0_i32 = arith.constant 0 : i32
    %c0_i32_0 = arith.constant 0 : i32
    %c0_i32_1 = arith.constant 0 : i32
    %c0_i32_2 = arith.constant 0 : i32
    return %arg0, %c0_i32, %c0_i32_0, %c0_i32_1 : i32, i32, i32, i32
  }
  func.func @transform_1(%arg0: i32) -> (i32, i32, i32, i32) {
    %c0_i32 = arith.constant 0 : i32
    %c0_i32_0 = arith.constant 0 : i32
    %c0_i32_1 = arith.constant 0 : i32
    %c0_i32_2 = arith.constant 0 : i32
    return %arg0, %c0_i32, %c0_i32_0, %c0_i32_1 : i32, i32, i32, i32
  }
  func.func @transform_2(%arg0: i32) -> (i32, i32, i32, i32) {
    %c0_i32 = arith.constant 0 : i32
    %c0_i32_0 = arith.constant 0 : i32
    %c0_i32_1 = arith.constant 0 : i32
    %c0_i32_2 = arith.constant 0 : i32
    return %arg0, %c0_i32, %c0_i32_0, %c0_i32_1 : i32, i32, i32, i32
  }
  func.func @transform_3(%arg0: i32) -> (i32, i32, i32, i32) {
    %c0_i32 = arith.constant 0 : i32
    %c0_i32_0 = arith.constant 0 : i32
    %c0_i32_1 = arith.constant 0 : i32
    %c0_i32_2 = arith.constant 0 : i32
    return %arg0, %c0_i32, %c0_i32_0, %c0_i32_1 : i32, i32, i32, i32
  }
}

module attributes {stable_mosaic.version = 11 : i64} {
  func.func @_mm_kernel(%arg0: i32, %arg1: i32, %arg2: i32, %arg3: memref<16x128xbf16, #tpu.memory_space<vmem>>, %arg4: memref<128x32xbf16, #tpu.memory_space<vmem>>, %arg5: memref<1x32xf32, #tpu.memory_space<vmem>>, %arg6: memref<16x32xf32, #tpu.memory_space<vmem>>, %arg7: memref<16x32xf32, #tpu.memory_space<vmem>>) attributes {dimension_semantics = [#tpu.dimension_semantics<parallel>, #tpu.dimension_semantics<parallel>, #tpu.dimension_semantics<arbitrary>], iteration_bounds = array<i64: 1, 1, 1>, scalar_prefetch = 0 : i64, scratch_operands = 1 : i64, tpu.core_type = #tpu.core_type<tc>, window_params = [{transform_indices = @transform_0, window_bounds = array<i64: 16, 128>}, {transform_indices = @transform_1, window_bounds = array<i64: 128, 32>}, {transform_indices = @transform_2, window_bounds = array<i64: 1, 32>}, {transform_indices = @transform_3, window_bounds = array<i64: 16, 32>}]} {
    %c0_i32 = arith.constant 0 : i32
    %0 = arith.cmpi eq, %arg2, %c0_i32 : i32
    %1 = arith.extui %0 : i1 to i32
    %c0_i32_0 = arith.constant 0 : i32
    %2 = arith.cmpi ne, %1, %c0_i32_0 : i32
    scf.if %2 {
      %cst_10 = arith.constant 0.000000e+00 : f32
      %12 = vector.broadcast %cst_10 : f32 to vector<16x32xf32>
      %c0_11 = arith.constant 0 : index
      %c0_12 = arith.constant 0 : index
      %13 = vector.load %arg7[%c0_11, %c0_12] : memref<16x32xf32, #tpu.memory_space<vmem>>, vector<16x32xf32>
      tpu.vector_store %arg7[%c0_11, %c0_12], %12 {strides = array<i32>} : memref<16x32xf32, #tpu.memory_space<vmem>>, vector<16x32xf32>,
    } else {
    }
    %c0 = arith.constant 0 : index
    %c0_1 = arith.constant 0 : index
    %3 = vector.load %arg7[%c0, %c0_1] : memref<16x32xf32, #tpu.memory_space<vmem>>, vector<16x32xf32>
    %c0_2 = arith.constant 0 : index
    %c0_3 = arith.constant 0 : index
    %4 = vector.load %arg3[%c0_2, %c0_3] : memref<16x128xbf16, #tpu.memory_space<vmem>>, vector<16x128xbf16>
    %c0_4 = arith.constant 0 : index
    %c0_5 = arith.constant 0 : index
    %5 = vector.load %arg4[%c0_4, %c0_5] : memref<128x32xbf16, #tpu.memory_space<vmem>>, vector<128x32xbf16>
    %cst = arith.constant dense<0.000000e+00> : vector<16x32xf32>
    %6 = tpu.matmul %4, %5, %cst {dimension_numbers = #tpu.dot_dimension_numbers<[1], [0], [0], [1], [0, 0, 1, 1], [], []>} : vector<16x128xbf16>, vector<128x32xbf16>, vector<16x32xf32> -> vector<16x32xf32>
    %7 = arith.addf %3, %6 : vector<16x32xf32>
    %c0_6 = arith.constant 0 : index
    %c0_7 = arith.constant 0 : index
    %8 = vector.load %arg7[%c0_6, %c0_7] : memref<16x32xf32, #tpu.memory_space<vmem>>, vector<16x32xf32>
    tpu.vector_store %arg7[%c0_6, %c0_7], %7 {strides = array<i32>} : memref<16x32xf32, #tpu.memory_space<vmem>>, vector<16x32xf32>,
    %c0_i32_8 = arith.constant 0 : i32
    %9 = arith.cmpi eq, %arg2, %c0_i32_8 : i32
    %10 = arith.extui %9 : i1 to i32
    %c0_i32_9 = arith.constant 0 : i32
    %11 = arith.cmpi ne, %10, %c0_i32_9 : i32
    scf.if %11 {
      %c0_10 = arith.constant 0 : index
      %c0_11 = arith.constant 0 : index
      %12 = vector.load %arg7[%c0_10, %c0_11] : memref<16x32xf32, #tpu.memory_space<vmem>>, vector<16x32xf32>
      %c0_12 = arith.constant 0 : index
      %c0_13 = arith.constant 0 : index
      %13 = vector.load %arg5[%c0_12, %c0_13] : memref<1x32xf32, #tpu.memory_space<vmem>>, vector<1x32xf32>
      %14 = vector.broadcast %13 : vector<1x32xf32> to vector<16x32xf32>
      %15 = arith.addf %12, %14 : vector<16x32xf32>
      %c0_14 = arith.constant 0 : index
      %c0_15 = arith.constant 0 : index
      %16 = vector.load %arg6[%c0_14, %c0_15] : memref<16x32xf32, #tpu.memory_space<vmem>>, vector<16x32xf32>
      tpu.vector_store %arg6[%c0_14, %c0_15], %15 {strides = array<i32>} : memref<16x32xf32, #tpu.memory_space<vmem>>, vector<16x32xf32>,
    } else {
    }
    return
  }
  func.func @transform_0(%arg0: i32, %arg1: i32, %arg2: i32) -> (i32, i32) {
    %c0_i32 = arith.constant 0 : i32
    return %arg0, %arg2 : i32, i32
  }
  func.func @transform_1(%arg0: i32, %arg1: i32, %arg2: i32) -> (i32, i32) {
    %c0_i32 = arith.constant 0 : i32
    return %arg2, %arg1 : i32, i32
  }
  func.func @transform_2(%arg0: i32, %arg1: i32, %arg2: i32) -> (i32, i32) {
    %c0_i32 = arith.constant 0 : i32
    %c0_i32_0 = arith.constant 0 : i32
    return %c0_i32, %arg1 : i32, i32
  }
  func.func @transform_3(%arg0: i32, %arg1: i32, %arg2: i32) -> (i32, i32) {
    %c0_i32 = arith.constant 0 : i32
    return %arg0, %arg1 : i32, i32
  }
}

module attributes {stable_mosaic.version = 11 : i64} {
  func.func @_mm_kernel(%arg0: i32, %arg1: i32, %arg2: i32, %arg3: memref<16x32xbf16, #tpu.memory_space<vmem>>, %arg4: memref<64x32xbf16, #tpu.memory_space<vmem>>, %arg5: memref<1x64xf32, #tpu.memory_space<vmem>>, %arg6: memref<16x64xf32, #tpu.memory_space<vmem>>, %arg7: memref<16x64xf32, #tpu.memory_space<vmem>>) attributes {dimension_semantics = [#tpu.dimension_semantics<parallel>, #tpu.dimension_semantics<parallel>, #tpu.dimension_semantics<arbitrary>], iteration_bounds = array<i64: 1, 1, 1>, scalar_prefetch = 0 : i64, scratch_operands = 1 : i64, tpu.core_type = #tpu.core_type<tc>, window_params = [{transform_indices = @transform_0, window_bounds = array<i64: 16, 32>}, {transform_indices = @transform_1, window_bounds = array<i64: 64, 32>}, {transform_indices = @transform_2, window_bounds = array<i64: 1, 64>}, {transform_indices = @transform_3, window_bounds = array<i64: 16, 64>}]} {
    %c0_i32 = arith.constant 0 : i32
    %0 = arith.cmpi eq, %arg2, %c0_i32 : i32
    %1 = arith.extui %0 : i1 to i32
    %c0_i32_0 = arith.constant 0 : i32
    %2 = arith.cmpi ne, %1, %c0_i32_0 : i32
    scf.if %2 {
      %cst_10 = arith.constant 0.000000e+00 : f32
      %12 = vector.broadcast %cst_10 : f32 to vector<16x64xf32>
      %c0_11 = arith.constant 0 : index
      %c0_12 = arith.constant 0 : index
      %13 = vector.load %arg7[%c0_11, %c0_12] : memref<16x64xf32, #tpu.memory_space<vmem>>, vector<16x64xf32>
      tpu.vector_store %arg7[%c0_11, %c0_12], %12 {strides = array<i32>} : memref<16x64xf32, #tpu.memory_space<vmem>>, vector<16x64xf32>,
    } else {
    }
    %c0 = arith.constant 0 : index
    %c0_1 = arith.constant 0 : index
    %3 = vector.load %arg7[%c0, %c0_1] : memref<16x64xf32, #tpu.memory_space<vmem>>, vector<16x64xf32>
    %c0_2 = arith.constant 0 : index
    %c0_3 = arith.constant 0 : index
    %4 = vector.load %arg3[%c0_2, %c0_3] : memref<16x32xbf16, #tpu.memory_space<vmem>>, vector<16x32xbf16>
    %c0_4 = arith.constant 0 : index
    %c0_5 = arith.constant 0 : index
    %5 = vector.load %arg4[%c0_4, %c0_5] : memref<64x32xbf16, #tpu.memory_space<vmem>>, vector<64x32xbf16>
    %cst = arith.constant dense<0.000000e+00> : vector<16x64xf32>
    %6 = tpu.matmul %4, %5, %cst {dimension_numbers = #tpu.dot_dimension_numbers<[1], [1], [0], [0], [0, 0, 1, 0], [], []>} : vector<16x32xbf16>, vector<64x32xbf16>, vector<16x64xf32> -> vector<16x64xf32>
    %7 = arith.addf %3, %6 : vector<16x64xf32>
    %c0_6 = arith.constant 0 : index
    %c0_7 = arith.constant 0 : index
    %8 = vector.load %arg7[%c0_6, %c0_7] : memref<16x64xf32, #tpu.memory_space<vmem>>, vector<16x64xf32>
    tpu.vector_store %arg7[%c0_6, %c0_7], %7 {strides = array<i32>} : memref<16x64xf32, #tpu.memory_space<vmem>>, vector<16x64xf32>,
    %c0_i32_8 = arith.constant 0 : i32
    %9 = arith.cmpi eq, %arg2, %c0_i32_8 : i32
    %10 = arith.extui %9 : i1 to i32
    %c0_i32_9 = arith.constant 0 : i32
    %11 = arith.cmpi ne, %10, %c0_i32_9 : i32
    scf.if %11 {
      %c0_10 = arith.constant 0 : index
      %c0_11 = arith.constant 0 : index
      %12 = vector.load %arg7[%c0_10, %c0_11] : memref<16x64xf32, #tpu.memory_space<vmem>>, vector<16x64xf32>
      %c0_12 = arith.constant 0 : index
      %c0_13 = arith.constant 0 : index
      %13 = vector.load %arg5[%c0_12, %c0_13] : memref<1x64xf32, #tpu.memory_space<vmem>>, vector<1x64xf32>
      %14 = vector.broadcast %13 : vector<1x64xf32> to vector<16x64xf32>
      %15 = arith.addf %12, %14 : vector<16x64xf32>
      %c0_14 = arith.constant 0 : index
      %c0_15 = arith.constant 0 : index
      %16 = vector.load %arg6[%c0_14, %c0_15] : memref<16x64xf32, #tpu.memory_space<vmem>>, vector<16x64xf32>
      tpu.vector_store %arg6[%c0_14, %c0_15], %15 {strides = array<i32>} : memref<16x64xf32, #tpu.memory_space<vmem>>, vector<16x64xf32>,
    } else {
    }
    return
  }
  func.func @transform_0(%arg0: i32, %arg1: i32, %arg2: i32) -> (i32, i32) {
    %c0_i32 = arith.constant 0 : i32
    return %arg0, %arg2 : i32, i32
  }
  func.func @transform_1(%arg0: i32, %arg1: i32, %arg2: i32) -> (i32, i32) {
    %c0_i32 = arith.constant 0 : i32
    return %arg1, %arg2 : i32, i32
  }
  func.func @transform_2(%arg0: i32, %arg1: i32, %arg2: i32) -> (i32, i32) {
    %c0_i32 = arith.constant 0 : i32
    %c0_i32_0 = arith.constant 0 : i32
    return %c0_i32, %arg1 : i32, i32
  }
  func.func @transform_3(%arg0: i32, %arg1: i32, %arg2: i32) -> (i32, i32) {
    %c0_i32 = arith.constant 0 : i32
    return %arg0, %arg1 : i32, i32
  }
}

</mosaic_0001>

<bundles_post_ra>
// kernel: text_decoder_forward.25
= control target key start
LH: loop header
LB: loop body
LE: loop exit
PB: predicated region body
PF: predicated region fallthrough
CT: control target
= control target key end

     0   :  { %vm19_vm0 = vcmask 785408   ;;  %v105_v1 = vmov 0.0   ;;  %vm47_vm1 = vcmask 261120   ;;  %s150_s1 = inlined_call_operand.vmem [shape: bf16[32,96], index: 1, kind: input, shape index: {}]   ;;  %s151_s2 = inlined_call_operand.vmem [shape: f32[1,96], index: 2, kind: input, shape index: {}]   ;;  %s152_s0 = inlined_call_operand.vmem [shape: bf16[16,32], index: 0, kind: input, shape index: {}]   ;;  %s153_s3 = inlined_call_operand.vmem [shape: f32[16,96], index: 3, kind: output, shape index: {}]  }
   0x1   :  { %v102_v0 = vld [vmem:[%s150_s1 + $0x8] sm:$0xff]  ;;  %20 = vst.msk [vmem:[#allocation2] sm:$0xff] %vm19_vm0, %v105_v1  ;;  %v101_v2 = vld [vmem:[%s150_s1] sm:$0xff] }
   0x2   :  { %21 = vst.msk [vmem:[#allocation2 + $0x8] sm:$0xff] %vm19_vm0, %v105_v1  ;;  %57 = vmatpush.bf16.msra.mxu0 %v102_v0  ;;  %v100_v3 = vld [vmem:[%s152_s0] sm:$0xff] }
   0x3   :  { %v104_v8 = vld [vmem:[%s151_s2] ss:$0 sm:$0xff] }
   0x6   :  { %58 = vmatpush.bf16.msra.mxu0 %v101_v2 }
   0x8   :  { %v22_v4 = vld [vmem:[#allocation2] sm:$0xff] }
   0x9   :  { %99 = vmatmul.msk.bf16.vlgmr.msra.gmra.mxu0 %vm47_vm1, %v100_v3  ;;  %v23_v7 = vld [vmem:[#allocation2 + $0x8] sm:$0xff] }
  0x86   :  { %v60_v5 = vpop.f32.mrf.mxu0 }
  0x87   :  { %v65_v6 = vadd.f32 %v60_v5, %v22_v4 }
  0x89   :  { %68 = vst.msk [vmem:[#allocation2] sm:$0xff] %vm19_vm0, %v65_v6 }
  0x8e   :  { %v62_v9 = vpop.f32.mrf.mxu0 }
  0x8f   :  { %v66_v10 = vadd.f32 %v62_v9, %v23_v7 }
  0x90   :  { %v73_v11 = vld [vmem:[#allocation2] sm:$0xff] }
  0x91   :  { %v79_v12 = vadd.f32 %v104_v8, %v73_v11  ;;  %69 = vst.msk [vmem:[#allocation2 + $0x8] sm:$0xff] %vm19_vm0, %v66_v10 }
  0x93   :  { %81 = vst.msk [vmem:[%s153_s3] sm:$0xff] %vm19_vm0, %v79_v12 }
  0x98   :  { %v74_v13 = vld [vmem:[#allocation2 + $0x8] sm:$0xff] }
  0x99   :  { %v80_v14 = vadd.f32 %v104_v8, %v74_v13 }
  0x9b   :  { %82 = vst.msk [vmem:[%s153_s3 + $0x8] sm:$0xff] %vm19_vm0, %v80_v14 }

// kernel: text_decoder_forward.27
= control target key start
LH: loop header
LB: loop body
LE: loop exit
PB: predicated region body
PF: predicated region fallthrough
CT: control target
= control target key end

     0   :  { %vm19_vm0 = vcmask 261120   ;;  %v104_v1 = vmov 0.0   ;;  %s150_s1 = inlined_call_operand.vmem [shape: bf16[32,32], index: 1, kind: input, shape index: {}]   ;;  %s151_s2 = inlined_call_operand.vmem [shape: f32[1,32], index: 2, kind: input, shape index: {}]   ;;  %s152_s0 = inlined_call_operand.vmem [shape: bf16[16,32], index: 0, kind: input, shape index: {}]   ;;  %s153_s3 = inlined_call_operand.vmem [shape: f32[16,32], index: 3, kind: output, shape index: {}]  }
   0x1   :  { %v101_v0 = vld [vmem:[%s150_s1 + $0x8] sm:$0xff]  ;;  %20 = vst.msk [vmem:[#allocation2] sm:$0xff] %vm19_vm0, %v104_v1  ;;  %v100_v2 = vld [vmem:[%s150_s1] sm:$0xff] }
   0x2   :  { %21 = vst.msk [vmem:[#allocation2 + $0x8] sm:$0xff] %vm19_vm0, %v104_v1  ;;  %57 = vmatpush.bf16.msra.mxu0 %v101_v0  ;;  %v99_v3 = vld [vmem:[%s152_s0] sm:$0xff] }
   0x3   :  { %v103_v8 = vld [vmem:[%s151_s2] ss:$0 sm:$0xff] }
   0x6   :  { %58 = vmatpush.bf16.msra.mxu0 %v100_v2 }
   0x8   :  { %v22_v4 = vld [vmem:[#allocation2] sm:$0xff] }
   0x9   :  { %98 = vmatmul.msk.bf16.vlgmr.msra.gmra.mxu0 %vm19_vm0, %v99_v3  ;;  %v23_v7 = vld [vmem:[#allocation2 + $0x8] sm:$0xff] }
  0x86   :  { %v60_v5 = vpop.f32.mrf.mxu0 }
  0x87   :  { %v65_v6 = vadd.f32 %v60_v5, %v22_v4 }
  0x89   :  { %67 = vst.msk [vmem:[#allocation2] sm:$0xff] %vm19_vm0, %v65_v6 }
  0x8e   :  { %v62_v9 = vpop.f32.mrf.mxu0 }
  0x8f   :  { %v66_v10 = vadd.f32 %v62_v9, %v23_v7 }
  0x90   :  { %v72_v11 = vld [vmem:[#allocation2] sm:$0xff] }
  0x91   :  { %v78_v12 = vadd.f32 %v103_v8, %v72_v11  ;;  %68 = vst.msk [vmem:[#allocation2 + $0x8] sm:$0xff] %vm19_vm0, %v66_v10 }
  0x93   :  { %80 = vst.msk [vmem:[%s153_s3] sm:$0xff] %vm19_vm0, %v78_v12 }
  0x98   :  { %v73_v13 = vld [vmem:[#allocation2 + $0x8] sm:$0xff] }
  0x99   :  { %v79_v14 = vadd.f32 %v103_v8, %v73_v13 }
  0x9b   :  { %81 = vst.msk [vmem:[%s153_s3 + $0x8] sm:$0xff] %vm19_vm0, %v79_v14 }

// kernel: text_decoder_forward.28
= control target key start
LH: loop header
LB: loop body
LE: loop exit
PB: predicated region body
PF: predicated region fallthrough
CT: control target
= control target key end

     0   :  { %vm16_vm0 = vcmask 261120   ;;  %v95_v4 = vmov 32.0   ;;  %s140_s0 = inlined_call_operand.vmem [shape: f32[16,32], index: 0, kind: input, shape index: {}]   ;;  %s141_s1 = inlined_call_operand.vmem [shape: f32[1,32], index: 1, kind: input, shape index: {}]   ;;  %s142_s2 = inlined_call_operand.vmem [shape: f32[1,32], index: 2, kind: input, shape index: {}]   ;;  %s143_s3 = inlined_call_operand.vmem [shape: f32[16,32], index: 3, kind: output, shape index: {}]  }
   0x1   :  { %v14_v0 = vld [vmem:[%s140_s0] sm:$0xff]  ;;  %v15_v2 = vld [vmem:[%s140_s0 + $0x8] sm:$0xff]  ;;  %89 = vrcp.f32 %v95_v4 }
   0x2   :  { %v17_v1 = vsel %vm16_vm0, %v14_v0, 0.0  ;;  %v20_v3 = vsel %vm16_vm0, %v15_v2, 0.0  ;;  %v87_v35 = vld [vmem:[%s141_s1] ss:$0 sm:$0xff] }
   0x3   :  { %18 = vadd.xlane.f32.xlu0 %v17_v1  ;;  %v88_v38 = vld [vmem:[%s142_s2] ss:$0 sm:$0xff] }
   0x7   :  { %v90_v5 = vpop.eup %89 }
   0x8   :  { %v24_v6 = vmul.f32 32.0, %v90_v5  ;;  %vm28_vm1 = vweird.f32 %v90_v5 }
   0xa   :  { %v25_v7 = vsub.f32 1.0, %v24_v6 }
   0xb   :  { %21 = vadd.xlane.f32.xlu0 %v20_v3 }
   0xc   :  { %v26_v8 = vmul.f32 %v90_v5, %v25_v7 }
   0xe   :  { %v27_v9 = vadd.f32 %v90_v5, %v26_v8 }
  0x10   :  { %v29_v10 = vsel %vm28_vm1, %v90_v5, %v27_v9 }
  0x76   :  { %v19_v11 = vpop.xlane.xlu0 %18 }
  0x77   :  { %v30_v12 = vmul.f32 %v29_v10, %v19_v11 }
  0x79   :  { %v32_v13 = vsub.f32 %v14_v0, %v30_v12 }
  0x7b   :  { %v34_v14 = vmul.f32 %v32_v13, %v32_v13 }
  0x7d   :  { %v36_v15 = vsel %vm16_vm0, %v34_v14, 0.0 }
  0x7e   :  { %37 = vadd.xlane.f32.xlu1 %v36_v15  ;;  %v22_v16 = vpop.xlane.xlu0 %21 }
  0x7f   :  { %v31_v17 = vmul.f32 %v29_v10, %v22_v16 }
  0x81   :  { %v33_v18 = vsub.f32 %v15_v2, %v31_v17 }
  0x83   :  { %v35_v19 = vmul.f32 %v33_v18, %v33_v18 }
  0x85   :  { %v39_v20 = vsel %vm16_vm0, %v35_v19, 0.0 }
  0x86   :  { %40 = vadd.xlane.f32.xlu1 %v39_v20 }
  0xf1   :  { %v38_v21 = vpop.xlane.xlu1 %37 }
  0xf2   :  { %v42_v22 = vmul.f32 %v38_v21, %v29_v10 }
  0xf4   :  { %v44_v23 = vadd.f32 1e-05, %v42_v22 }
  0xf6   :  { %91 = vrsqrt.f32 %v44_v23  ;;  %vm52_vm3 = vweird.f32 %v44_v23 }
  0xf9   :  { %v41_v24 = vpop.xlane.xlu1 %40 }
  0xfa   :  { %v43_v25 = vmul.f32 %v41_v24, %v29_v10 }
  0xfc   :  { %v92_v26 = vpop.eup %91  ;;  %v45_v27 = vadd.f32 1e-05, %v43_v25 }
  0xfd   :  { %v47_v28 = vmul.f32 %v92_v26, %v44_v23  ;;  %vm53_vm2 = vweird.f32 %v92_v26 }
  0xfe   :  { %93 = vrsqrt.f32 %v45_v27  ;;  %vm54_vm4 = vmor %vm52_vm3, %vm53_vm2  ;;  %vm62_vm6 = vweird.f32 %v45_v27 }
  0xff   :  { %v48_v29 = vmul.f32 %v92_v26, %v47_v28 }
 0x101   :  { %v49_v30 = vmul.f32 0.5, %v48_v29 }
 0x103   :  { %v50_v31 = vsub.f32 1.5, %v49_v30 }
 0x104   :  { %v94_v32 = vpop.eup %93 }
 0x105   :  { %v51_v33 = vmul.f32 %v92_v26, %v50_v31  ;;  %v57_v34 = vmul.f32 %v94_v32, %v45_v27  ;;  %vm63_vm5 = vweird.f32 %v94_v32 }
 0x106   :  { %vm64_vm7 = vmor %vm62_vm6, %vm63_vm5 }
 0x107   :  { %v55_v36 = vsel %vm54_vm4, %v92_v26, %v51_v33  ;;  %v58_v37 = vmul.f32 %v94_v32, %v57_v34 }
 0x108   :  { %v66_v39 = vmul.f32 %v55_v36, %v32_v13 }
 0x109   :  { %v59_v40 = vmul.f32 0.5, %v58_v37 }
 0x10a   :  { %v72_v41 = vmul.f32 %v87_v35, %v66_v39 }
 0x10b   :  { %v60_v42 = vsub.f32 1.5, %v59_v40 }
 0x10c   :  { %v78_v43 = vadd.f32 %v88_v38, %v72_v41 }
 0x10d   :  { %v61_v44 = vmul.f32 %v94_v32, %v60_v42 }
 0x10e   :  { %80 = vst.msk [vmem:[%s143_s3] sm:$0xff] %vm16_vm0, %v78_v43 }
 0x10f   :  { %v65_v45 = vsel %vm64_vm7, %v94_v32, %v61_v44 }
 0x110   :  { %v67_v46 = vmul.f32 %v65_v45, %v33_v18 }
 0x112   :  { %v73_v47 = vmul.f32 %v87_v35, %v67_v46 }
 0x114   :  { %v79_v48 = vadd.f32 %v88_v38, %v73_v47 }
 0x116   :  { %81 = vst.msk [vmem:[%s143_s3 + $0x8] sm:$0xff] %vm16_vm0, %v79_v48 }

// kernel: text_decoder_forward.26
= control target key start
LH: loop header
LB: loop body
LE: loop exit
PB: predicated region body
PF: predicated region fallthrough
CT: control target
= control target key end

     0   :  { %s1253_s12 = smov 0   ;;  %s1484_s0 = inlined_call_operand.vmem [shape: bf16[2,8,4,8], index: 0, kind: input, shape index: {}]   ;;  %s1485_s1 = inlined_call_operand.vmem [shape: bf16[2,8,4,8], index: 1, kind: input, shape index: {}]   ;;  %s1486_s2 = inlined_call_operand.vmem [shape: bf16[2,8,4,8], index: 2, kind: input, shape index: {}]   ;;  %s1487_s3 = inlined_call_operand.vmem [shape: f32[2,8,4,8], index: 3, kind: output, shape index: {}]  }
   0x1 LB: > { %s1145_s13 = sadd.s32 4294967295, %s1229_s12   ;;  %p1149_p0 = scmp.ge.s32.totalorder %s1229_s12, 1  ;;  %s1229_s12 = sphi %s1253_s12, %s13_s12  }
   0x2   : > { %p157_p1 = scmp.lt.s32.totalorder %s1229_s12, 3 }
   0x4   : > { %p158_p2 = pnand %p1149_p0, %p157_p1 }
   0x5   : > { %p191_p3 = scmp.lt.s32.totalorder (!%p158_p2), %s1145_s13, 1 }
   0x6   : > { %161 = sbr.rel (%p158_p2) target bundleno = 852 (0x354), region = 32 }
   0xb   : > { %s1489_s13 = smov (!%p191_p3, %s1145_s13), 1  ;;  %v1231_v3 = vmov 1934713408   ;;  %vm237_vm0 = vcmask 1047556   ;;  %vm698_vm1 = vcmask 1043456   ;;  %vm695_vm2 = vcmask 64512  }
   0xc   : > { %s1168_s14 = sshll.u32 %s1489_s13, 4  ;;  %v240_v4 = vunpack.c.l.s4 %v1231_v3  ;;  %s1171_s24 = sshll.u32 %s1489_s13, 5  ;;  %vm1057_vm4 = vcmask 60416  }
   0xd   : > { %s1267_s17 = scalar_lea.vmem %s1485_s1, %s1168_s14  ;;  %s205_s20 = scalar_lea.vmem %s1486_s2, %s1168_s14 }
   0xe   : > { %v226_v0 = vld [vmem:[%s1267_s17 + $0xc] sm:$0x3]  ;;  %v227_v1 = vld [vmem:[%s1267_s17 + $0xe] sm:$0x3]  ;;  %v228_v2 = vld [vmem:[%s205_s20] sm:$0x3]  ;;  %s1277_s23 = scalar_lea.vmem %s1484_s0, %s1168_s14  ;;  %v1279_v15 = vunpack.c.0.s8 %v240_v4  ;;  %s210_s27 = scalar_lea.vmem %s1487_s3, %s1171_s24 }
   0xf   : > { %v229_v5 = vld [vmem:[%s205_s20 + $0x2] sm:$0x3]  ;;  %v230_v6 = vld [vmem:[%s205_s20 + $0x4] sm:$0x3]  ;;  %v231_v7 = vld [vmem:[%s205_s20 + $0x6] sm:$0x3] }
  0x10   : > { %v232_v8 = vld [vmem:[%s205_s20 + $0x8] sm:$0x3]  ;;  %v233_v9 = vld [vmem:[%s205_s20 + $0xa] sm:$0x3]  ;;  %v234_v10 = vld [vmem:[%s205_s20 + $0xc] sm:$0x3] }
  0x11   : > { %v235_v11 = vld [vmem:[%s205_s20 + $0xe] sm:$0x3]  ;;  %v840_v12 = vrot.slane %v230_v6, 4  ;;  %v848_v13 = vrot.slane %v231_v7, 4  ;;  %v856_v14 = vrot.slane %v234_v10, 4  ;;  %1189 = vxpose.binary.xlu1.c.b16.start.end [1/2] (short) (narrow) %v227_v1, %v226_v0, 16 }
  0x12   : > { %v864_v16 = vrot.slane %v235_v11, 4  ;;  %v214_v24 = vld [vmem:[%s1277_s23 + $0x4] sm:$0x3]  ;;  %v215_v25 = vld [vmem:[%s1277_s23 + $0x6] sm:$0x3] }
  0x13   : > { %v841_v17 = vsel %vm237_vm0, %v840_v12, %v228_v2  ;;  %v849_v18 = vsel %vm237_vm0, %v848_v13, %v229_v5  ;;  %v857_v19 = vsel %vm237_vm0, %v856_v14, %v232_v8  ;;  %v218_v26 = vld [vmem:[%s1277_s23 + $0xc] sm:$0x3]  ;;  %v224_v28 = vld [vmem:[%s1267_s17 + $0x8] sm:$0x3]  ;;  %v212_v32 = vld [vmem:[%s1277_s23] sm:$0x3] }
  0x14   : > { %v1285_v20 = vperm.slane %v841_v17, %v1279_v15  ;;  %v1288_v21 = vperm.slane %v849_v18, %v1279_v15  ;;  %v1291_v22 = vperm.slane %v857_v19, %v1279_v15  ;;  %v865_v23 = vsel %vm237_vm0, %v864_v16, %v233_v9  ;;  %v213_v33 = vld [vmem:[%s1277_s23 + $0x2] sm:$0x3]  ;;  %v225_v34 = vld [vmem:[%s1267_s17 + $0xa] sm:$0x3]  ;;  %v216_v42 = vld [vmem:[%s1277_s23 + $0x8] sm:$0x3] }
  0x15   : > { %v1298_v27 = vperm.slane %v865_v23, %v1279_v15  ;;  %v236_v36 = vrot.slane %v214_v24, 4  ;;  %v245_v37 = vrot.slane %v215_v25, 4  ;;  %v253_v38 = vrot.slane %v218_v26, 4  ;;  %1183 = vxpose.binary.xlu0.c.b16.start.end [1/2] (short) (narrow) %v225_v34, %v224_v28, 16  ;;  %v219_v49 = vld [vmem:[%s1277_s23 + $0xe] sm:$0x3] }
  0x16   : > { %v846_v29 = vrot.slane %v1285_v20, 4  ;;  %v854_v30 = vrot.slane %v1288_v21, 4  ;;  %v862_v31 = vrot.slane %v1291_v22, 4  ;;  %v217_v55 = vld [vmem:[%s1277_s23 + $0xa] sm:$0x3]  ;;  %v261_v60 = vrot.slane %v219_v49, 4 }
  0x17   : > { %v870_v35 = vrot.slane %v1298_v27, 4  ;;  %v238_v51 = vsel %vm237_vm0, %v236_v36, %v212_v32  ;;  %v246_v52 = vsel %vm237_vm0, %v245_v37, %v213_v33  ;;  %v254_v53 = vsel %vm237_vm0, %v253_v38, %v216_v42  ;;  %v222_v0 = vld [vmem:[%s1267_s17 + $0x4] sm:$0x3]  ;;  %v223_v1 = vld [vmem:[%s1267_s17 + $0x6] sm:$0x3] }
  0x18   : > { %v1309_v39 = vsel %vm237_vm0, 0, %v846_v29  ;;  %v1312_v40 = vsel %vm237_vm0, 0, %v854_v30  ;;  %v1315_v41 = vsel %vm237_vm0, 0, %v862_v31  ;;  %v242_v56 = vperm.slane %v238_v51, %v1279_v15  ;;  %v220_v13 = vld [vmem:[%s1267_s17] sm:$0x3] }
  0x19   : > { %v1319_v43 = vsel %vm237_vm0, 0, %v870_v35  ;;  %v880_v44 = vpack.i.b16 %v1312_v40, %v1309_v39  ;;  %v881_v45 = vshrl.u32 %v1309_v39, 16  ;;  %v882_v46 = vshrl.u32 %v1312_v40, 16  ;;  %v221_v14 = vld [vmem:[%s1267_s17 + $0x2] sm:$0x3] }
  0x1a   : > { %v892_v47 = vpack.i.b16 %v1319_v43, %v1315_v41  ;;  %v893_v48 = vshrl.u32 %v1315_v41, 16  ;;  %v894_v50 = vshrl.u32 %v1319_v43, 16  ;;  %v250_v57 = vperm.slane %v246_v52, %v1279_v15 }
  0x1b   : > { %v1333_v54 = vpack.i.b16 %v882_v46, %v881_v45  ;;  %v258_v59 = vperm.slane %v254_v53, %v1279_v15  ;;  %v243_v61 = vrot.slane %v242_v56, 4  ;;  %v262_v3 = vsel %vm237_vm0, %v261_v60, %v217_v55 }
  0x1c   : > { %v1338_v58 = vpack.i.b16 %v894_v50, %v893_v48  ;;  %v251_v62 = vrot.slane %v250_v57, 4  ;;  %v271_v63 = vpack.i.b16 %v250_v57, %v242_v56  ;;  %v266_v5 = vperm.slane %v262_v3, %v1279_v15 }
  0x1d   : > { %v259_v2 = vrot.slane %v258_v59, 4  ;;  %v244_v4 = vsel %vm237_vm0, 0, %v243_v61  ;;  %v272_v17 = vshrl.u32 %v242_v56, 16  ;;  %v273_v18 = vshrl.u32 %v250_v57, 16 }
  0x1e   : > { %690 = vst [vmem:[#allocation1] ss:$4 sm:$0xff] %v271_v63  ;;  %v252_v6 = vsel %vm237_vm0, 0, %v251_v62  ;;  %v278_v7 = vshrl.u32 %v244_v4, 16  ;;  %v267_v9 = vrot.slane %v266_v5, 4  ;;  %v283_v11 = vpack.i.b16 %v266_v5, %v258_v59 }
  0x1f   : > { %v260_v8 = vsel %vm237_vm0, 0, %v259_v2  ;;  %v279_v10 = vshrl.u32 %v252_v6, 16  ;;  %v284_v23 = vshrl.u32 %v258_v59, 16  ;;  %v285_v24 = vshrl.u32 %v266_v5, 16 }
  0x20   : > { %v290_v12 = vshrl.u32 %v260_v8, 16  ;;  %v268_v16 = vsel %vm237_vm0, 0, %v267_v9  ;;  %693 = vst [vmem:[#allocation1 + $0x1] ss:$4 sm:$0xff] %v283_v11  ;;  %v274_v28 = vpack.i.b16 %v273_v18, %v272_v17  ;;  %v277_v31 = vpack.i.b16 %v252_v6, %v244_v4 }
  0x21   : > { %1192 = vxpose.binary.xlu1.c.b16.start.end [1/2] (short) (narrow) %v223_v1, %v222_v0, 16  ;;  %v1351_v19 = vpack.i.b16 %v279_v10, %v278_v7  ;;  %v291_v25 = vshrl.u32 %v268_v16, 16  ;;  %v286_v29 = vpack.i.b16 %v285_v24, %v284_v23  ;;  %v289_v32 = vpack.i.b16 %v268_v16, %v260_v8 }
  0x22   : > { %v1232_v38 = vmov 1983009808  }
  0x23   : > { %v1353_v26 = vpack.i.b16 %v291_v25, %v290_v12  ;;  %v424_v42 = vunpack.c.l.s4 %v1232_v38 }
  0x25   : > { %1186 = vxpose.binary.xlu0.c.b16.start.end [1/2] (short) (narrow) %v221_v14, %v220_v13, 16  ;;  %v1359_v48 = vunpack.c.0.s8 %v424_v42 }
  0x27   : > { %v1355_v30 = vld.sshfl [vmem:[#allocation1] sm:$0xff pattern:$0x73625140] }
  0x28   : > { %716 = vst [vmem:[#allocation1] ss:$4 sm:$0xff] %v274_v28 }
  0x29   : > { %719 = vst [vmem:[#allocation1 + $0x1] ss:$4 sm:$0xff] %v286_v29 }
  0x30   : > { %v1357_v33 = vld.sshfl [vmem:[#allocation1] sm:$0xff pattern:$0x73625140] }
  0x31   : > { %740 = vst [vmem:[#allocation1] ss:$4 sm:$0xff] %v277_v31 }
  0x32   : > { %743 = vst [vmem:[#allocation1 + $0x1] ss:$4 sm:$0xff] %v289_v32 }
  0xbd   : > { %v1190_v34 = vpop.trf.xlu1 }
  0xbe   : > { %v427_v46 = vrot.slane %v1190_v34, 4 }
  0xc1   : > { %v1184_v35 = vpop.trf.xlu0 }
  0xc2   : > { %v421_v50 = vrot.slane %v1184_v35, 4 }
  0xc5   : > { %v1191_v36 = vpop.trf.xlu1 }
  0xc6   : > { %v455_v53 = vrot.slane %v1191_v36, 4 }
  0xc9   : > { %v1185_v37 = vpop.trf.xlu0 }
  0xca   : > { %v449_v0 = vrot.slane %v1185_v37, 4 }
  0xcd   : > { %v1193_v45 = vpop.trf.xlu1 }
  0xce   : > { %v428_v49 = vsel %vm237_vm0, %v427_v46, %v1193_v45 }
  0xcf   : > { %v432_v51 = vperm.slane %v428_v49, %v1359_v48 }
  0xd1   : > { %v1187_v52 = vpop.trf.xlu0  ;;  %v433_v60 = vrot.slane %v432_v51, 4 }
  0xd2   : > { %v422_v55 = vsel %vm237_vm0, %v421_v50, %v1187_v52 }
  0xd3   : > { %v426_v56 = vperm.slane %v422_v55, %v1359_v48  ;;  %v1381_v55 = vld.sshfl [vmem:[#allocation1] sm:$0xff pattern:$0x73625140] }
  0xd4   : > { %764 = vst [vmem:[#allocation1] ss:$4 sm:$0xff] %v1351_v19  ;;  %v887_v19 = vshrl.u32 %v1291_v22, 16 }
  0xd5   : > { %v1194_v57 = vpop.trf.xlu1  ;;  %v435_v61 = vrot.slane %v426_v56, 4  ;;  %v434_v1 = vsel %vm237_vm0, %v433_v60, %v426_v56  ;;  %767 = vst [vmem:[#allocation1 + $0x1] ss:$4 sm:$0xff] %v1353_v26  ;;  %v886_v60 = vpack.i.b16 %v1298_v27, %v1291_v22  ;;  %v888_v26 = vshrl.u32 %v1298_v27, 16 }
  0xd6   : > { %v456_v59 = vsel %vm237_vm0, %v455_v53, %v1194_v57  ;;  %v440_v7 = vperm.slane %v434_v1, %v1279_v15  ;;  %v876_v1 = vshrl.u32 %v1288_v21, 16 }
  0xd7   : > { %v460_v62 = vperm.slane %v456_v59, %v1359_v48  ;;  %v436_v63 = vsel %vm237_vm0, %v432_v51, %v435_v61  ;;  %v874_v59 = vpack.i.b16 %v1288_v21, %v1285_v20 }
  0xd8   : > { %v444_v4 = vperm.slane %v436_v63, %v1279_v15  ;;  %v481_v14 = vshrl.u32 %v440_v7, 16  ;;  %v445_v42 = vrot.slane %v440_v7, 4 }
  0xd9   : > { %v461_v2 = vrot.slane %v460_v62, 4  ;;  %v1188_v3 = vpop.trf.xlu0 }
  0xda   : > { %v450_v5 = vsel %vm237_vm0, %v449_v0, %v1188_v3  ;;  %v447_v10 = vrot.slane %v444_v4, 4  ;;  %v497_v17 = vshrl.u32 %v444_v4, 16  ;;  %v446_v46 = vsel %vm237_vm0, 0, %v445_v42 }
  0xdb   : > { %v454_v6 = vperm.slane %v450_v5, %v1359_v48  ;;  %v489_v50 = vshrl.u32 %v446_v46, 16  ;;  %v875_v0 = vshrl.u32 %v1285_v20, 16  ;;  %v889_v20 = vpack.i.b16 %v888_v26, %v887_v19 }
  0xdc   : > { %v448_v18 = vsel %vm237_vm0, 0, %v447_v10  ;;  %v768_v63 = vld.sshfl [vmem:[#allocation1] sm:$0xff pattern:$0x73625140] }
  0xdd   : > { %v462_v8 = vsel %vm237_vm0, %v461_v2, %v454_v6  ;;  %v463_v9 = vrot.slane %v454_v6, 4  ;;  %v505_v34 = vshrl.u32 %v448_v18, 16  ;;  %897 = vst [vmem:[#allocation1] ss:$4 sm:$0xff] %v874_v59 }
  0xde   : > { %v468_v11 = vperm.slane %v462_v8, %v1279_v15  ;;  %900 = vst [vmem:[#allocation1 + $0x1] ss:$4 sm:$0xff] %v886_v60 }
  0xdf   : > { %v464_v12 = vsel %vm237_vm0, %v460_v62, %v463_v9 }
  0xe0   : > { %v472_v13 = vperm.slane %v464_v12, %v1279_v15  ;;  %v482_v16 = vshrl.u32 %v468_v11, 16  ;;  %v479_v24 = vpack.i.b16 %v468_v11, %v440_v7  ;;  %v473_v38 = vrot.slane %v468_v11, 4 }
  0xe1   : > { %v877_v7 = vpack.i.b16 %v876_v1, %v875_v0 }
  0xe2   : > { %v498_v23 = vshrl.u32 %v472_v13, 16  ;;  %v483_v25 = vpack.i.b16 %v482_v16, %v481_v14  ;;  %v475_v28 = vrot.slane %v472_v13, 4  ;;  %v495_v29 = vpack.i.b16 %v472_v13, %v444_v4 }
  0xe3   : > { %v474_v45 = vsel %vm237_vm0, 0, %v473_v38 }
  0xe4   : > { %v499_v31 = vpack.i.b16 %v498_v23, %v497_v17  ;;  %1204 = vxpose.binary.xlu1.c.b16.start.end [1/2] (short) (narrow) %v483_v25, %v479_v24, 16  ;;  %v476_v32 = vsel %vm237_vm0, 0, %v475_v28  ;;  %v490_v49 = vshrl.u32 %v474_v45, 16  ;;  %v487_v51 = vpack.i.b16 %v474_v45, %v446_v46 }
  0xe5   : > { %v506_v35 = vshrl.u32 %v476_v32, 16  ;;  %v503_v36 = vpack.i.b16 %v476_v32, %v448_v18  ;;  %v1397_v12 = vld.sshfl [vmem:[#allocation1] sm:$0xff pattern:$0x73625140] }
  0xe6   : > { %1201 = vxpose.binary.xlu0.c.b16.start.end [1/2] (short) (narrow) %v499_v31, %v495_v29, 16  ;;  %v491_v52 = vpack.i.b16 %v490_v49, %v489_v50  ;;  %921 = vst [vmem:[#allocation1] ss:$4 sm:$0xff] %v877_v7 }
  0xe7   : > { %v507_v37 = vpack.i.b16 %v506_v35, %v505_v34  ;;  %924 = vst [vmem:[#allocation1 + $0x1] ss:$4 sm:$0xff] %v889_v20 }
  0xe9   : > { %1195 = vxpose.binary.xlu2.c.b16.start.end [1/2] (short) (narrow) %v507_v37, %v503_v36, 16 }
  0xf9   : > { %1198 = vxpose.binary.xlu2.c.b16.start.end [1/2] (short) (narrow) %v491_v52, %v487_v51, 16 }
 0x18a   : > { %v1196_v53 = vpop.trf.xlu2 }
 0x18b   : > { %v643_v2 = vrot.slane %v1196_v53, 4 }
 0x190   : > { %v1205_v61 = vpop.trf.xlu1 }
 0x192   : > { %v1197_v56 = vpop.trf.xlu2  ;;  %v1202_v57 = vpop.trf.xlu0 }
 0x193   : > { %v637_v62 = vrot.slane %v1202_v57, 4  ;;  %v663_v27 = vrot.slane %v1197_v56, 4  ;;  %v791_v56 = vlaneseq }
 0x195   : > { %v638_v3 = vsel %vm237_vm0, %v637_v62, %v1205_v61  ;;  %v792_v57 = vshrl.u32 %v791_v56, 7  ;;  %v794_v59 = vand.u32 127, %v791_v56 }
 0x196   : > { %v642_v9 = vperm.slane %v638_v3, %v1359_v48 }
 0x197   : > { %vm795_vm3 = vcmp.gt.s32.totalorder %v794_v59, %v792_v57 }
 0x198   : > { %v1206_v11 = vpop.trf.xlu1 }
 0x19a   : > { %v1199_v4 = vpop.trf.xlu2  ;;  %v1203_v5 = vpop.trf.xlu0 }
 0x19b   : > { %v644_v6 = vsel %vm237_vm0, %v643_v2, %v1199_v4  ;;  %v657_v10 = vrot.slane %v1203_v5, 4 }
 0x19c   : > { %v648_v8 = vperm.slane %v644_v6, %v1359_v48 }
 0x19d   : > { %v658_v13 = vsel %vm237_vm0, %v657_v10, %v1206_v11  ;;  %v925_v10 = vld.sshfl [vmem:[#allocation1] sm:$0xff pattern:$0x73625140] }
 0x19e   : > { %v649_v21 = vrot.slane %v648_v8, 4  ;;  %v662_v23 = vperm.slane %v658_v13, %v1359_v48  ;;  %945 = vst [vmem:[#allocation1] ss:$4 sm:$0xff] %v880_v44 }
 0x19f   : > { %948 = vst [vmem:[#allocation1 + $0x1] ss:$4 sm:$0xff] %v892_v47 }
 0x1a0   : > { %v650_v22 = vsel %vm237_vm0, %v649_v21, %v642_v9  ;;  %v905_v21 = vsel %vm698_vm1, %v1397_v12, 0 }
 0x1a1   : > { %v654_v17 = vperm.slane %v650_v22, %v1279_v15 }
 0x1a2   : > { %v1200_v14 = vpop.trf.xlu2 }
 0x1a3   : > { %v664_v16 = vsel %vm237_vm0, %v663_v27, %v1200_v14  ;;  %v655_v25 = vrot.slane %v654_v17, 4  ;;  %v680_v31 = vshrl.u32 %v654_v17, 16  ;;  %v929_v27 = vsel %vm698_vm1, %v925_v10, 0 }
 0x1a4   : > { %v668_v18 = vperm.slane %v664_v16, %v1359_v48 }
 0x1a5   : > { %v656_v35 = vsel %vm237_vm0, 0, %v655_v25 }
 0x1a6   : > { %v669_v24 = vrot.slane %v668_v18, 4  ;;  %v686_v46 = vshrl.u32 %v656_v35, 16  ;;  %v949_v11 = vld.sshfl [vmem:[#allocation1] sm:$0xff pattern:$0x73625140] }
 0x1a7   : > { %v953_v22 = vsel %vm698_vm1, %v949_v11, 0  ;;  %969 = vst [vmem:[#allocation1] ss:$4 sm:$0xff] %v1333_v54 }
 0x1a8   : > { %v670_v28 = vsel %vm237_vm0, %v669_v24, %v662_v23  ;;  %972 = vst [vmem:[#allocation1 + $0x1] ss:$4 sm:$0xff] %v1338_v58 }
 0x1a9   : > { %v674_v29 = vperm.slane %v670_v28, %v1279_v15 }
 0x1ab   : > { %v679_v32 = vpack.i.b16 %v674_v29, %v654_v17  ;;  %v681_v34 = vshrl.u32 %v674_v29, 16  ;;  %v675_v36 = vrot.slane %v674_v29, 4 }
 0x1ad   : > { %v700_v37 = vsel %vm698_vm1, %v679_v32, 0  ;;  %v682_v38 = vpack.i.b16 %v681_v34, %v680_v31  ;;  %v676_v42 = vsel %vm237_vm0, 0, %v675_v36 }
 0x1ae   : > { %709 = vmatpush.bf16.msra.mxu0 %v700_v37  ;;  %v685_v45 = vpack.i.b16 %v676_v42, %v656_v35  ;;  %v687_v49 = vshrl.u32 %v676_v42, 16 }
 0x1af   : > { %v724_v50 = vsel %vm698_vm1, %v682_v38, 0  ;;  %v973_v39 = vld.sshfl [vmem:[#allocation1] sm:$0xff pattern:$0x73625140] }
 0x1b0   : > { %733 = vmatpush.bf16.msra.mxu1 %v724_v50  ;;  %v748_v51 = vsel %vm698_vm1, %v685_v45, 0  ;;  %v688_v52 = vpack.i.b16 %v687_v49, %v686_v46  ;;  %v977_v40 = vsel %vm698_vm1, %v973_v39, 0 }
 0x1b1   : > { %1158 = vmatmul.msk.bf16.vlgmr.msra.gmra.mxu0 %vm695_vm2, %v1355_v30  ;;  %757 = vmatpush.bf16.msra.mxu2 %v748_v51 }
 0x1b2   : > { %v772_v53 = vsel %vm698_vm1, %v688_v52, 0  ;;  %914 = vmatpush.bf16.msrb.mxu0 %v905_v21 }
 0x1b3   : > { %781 = vmatpush.bf16.msra.mxu3 %v772_v53  ;;  %1159 = vmatmul.msk.bf16.vlgmr.msra.gmra.mxu1 %vm695_vm2, %v1357_v33 }
 0x1b4   : > { %1160 = vmatmul.msk.bf16.vlgmr.msra.gmra.mxu2 %vm695_vm2, %v1381_v55  ;;  %938 = vmatpush.bf16.msrb.mxu1 %v929_v27 }
 0x1b5   : > { %962 = vmatpush.bf16.msrb.mxu2 %v953_v22 }
 0x1b6   : > { %1161 = vmatmul.msk.bf16.vlgmr.msra.gmra.mxu3 %vm695_vm2, %v768_v63 }
 0x1b7   : > { %986 = vmatpush.bf16.msrb.mxu3 %v977_v40 }
 0x22e   : > { %v711_v60 = vpop.f32.mrf.mxu0 }
 0x22f   : > { %v787_v61 = vmul.f32 0.35355338, %v711_v60 }
 0x230   : > { %v735_v62 = vpop.f32.mrf.mxu1 }
 0x231   : > { %v788_v30 = vmul.f32 0.35355338, %v735_v62  ;;  %v796_v0 = vsel %vm795_vm3, -1e+30, %v787_v61 }
 0x232   : > { %v800_v1 = vsel %vm695_vm2, %v796_v0, -inf }
 0x233   : > { %801 = vmax.xlane.f32.xlu1 %v800_v1  ;;  %v797_v33 = vsel %vm795_vm3, -1e+30, %v788_v30 }
 0x234   : > { %v803_v63 = vsel %vm695_vm2, %v797_v33, -inf }
 0x236   : > { %v713_v19 = vpop.f32.mrf.mxu0 }
 0x237   : > { %v759_v26 = vpop.f32.mrf.mxu2 }
 0x238   : > { %v789_v55 = vmul.f32 0.35355338, %v759_v26  ;;  %v737_v2 = vpop.f32.mrf.mxu1 }
 0x239   : > { %v783_v3 = vpop.f32.mrf.mxu3 }
 0x23a   : > { %v790_v4 = vmul.f32 0.35355338, %v783_v3  ;;  %v798_v5 = vsel %vm795_vm3, -1e+30, %v789_v55 }
 0x23b   : > { %804 = vmax.xlane.f32.xlu1 %v803_v63  ;;  %v806_v6 = vsel %vm695_vm2, %v798_v5, -inf }
 0x23c   : > { %807 = vmax.xlane.f32.xlu2 %v806_v6  ;;  %v799_v7 = vsel %vm795_vm3, -1e+30, %v790_v4 }
 0x23d   : > { %v809_v8 = vsel %vm695_vm2, %v799_v7, -inf }
 0x23e   : > { %810 = vmax.xlane.f32.xlu0 %v809_v8 }
 0x23f   : > { %v761_v9 = vpop.f32.mrf.mxu2 }
 0x241   : > { %v785_v20 = vpop.f32.mrf.mxu3 }
 0x2a6   : > { %v802_v41 = vpop.xlane.xlu1 %801 }
 0x2a7   : > { %v812_v43 = vsub.f32 %v796_v0, %v802_v41 }
 0x2a9   : > { %v816_v44 = vmul.f32 1.442695, %v812_v43 }
 0x2ab   : > { %1207 = vpow2.f32 %v816_v44 }
 0x2ae   : > { %v805_v47 = vpop.xlane.xlu1 %804 }
 0x2af   : > { %v813_v12 = vsub.f32 %v797_v33, %v805_v47  ;;  %v808_v13 = vpop.xlane.xlu2 %807 }
 0x2b0   : > { %v814_v14 = vsub.f32 %v798_v5, %v808_v13 }
 0x2b1   : > { %v1208_v16 = vpop.eup %1207  ;;  %v818_v54 = vmul.f32 1.442695, %v813_v12  ;;  %v811_v17 = vpop.xlane.xlu0 %810 }
 0x2b2   : > { %v820_v18 = vmul.f32 1.442695, %v814_v14  ;;  %v815_v58 = vsub.f32 %v799_v7, %v811_v17  ;;  %v824_v23 = vsel %vm695_vm2, %v1208_v16, 0.0  ;;  %v836_v24 = vpack.c.bf16 %v1208_v16, %v1208_v16 }
 0x2b3   : > { %1209 = vpow2.f32 %v818_v54  ;;  %825 = vadd.xlane.f32.xlu2 %v824_v23 }
 0x2b4   : > { %1211 = vpow2.f32 %v820_v18  ;;  %v822_v25 = vmul.f32 1.442695, %v815_v58  ;;  %1162 = vmatmul.msk.bf16.vlgmr.msrb.gmra.mxu0 %vm695_vm2, %v836_v24 }
 0x2b6   : > { %1213 = vpow2.f32 %v822_v25 }
 0x2b9   : > { %v1210_v28 = vpop.eup %1209 }
 0x2ba   : > { %v1212_v29 = vpop.eup %1211  ;;  %v827_v31 = vsel %vm695_vm2, %v1210_v28, 0.0  ;;  %v837_v32 = vpack.c.bf16 %v1210_v28, %v1210_v28 }
 0x2bb   : > { %828 = vadd.xlane.f32.xlu1 %v827_v31  ;;  %v830_v34 = vsel %vm695_vm2, %v1212_v29, 0.0  ;;  %v838_v35 = vpack.c.bf16 %v1212_v29, %v1212_v29 }
 0x2bc   : > { %v1214_v36 = vpop.eup %1213  ;;  %1163 = vmatmul.msk.bf16.vlgmr.msrb.gmra.mxu1 %vm695_vm2, %v837_v32  ;;  %831 = vadd.xlane.f32.xlu2 %v830_v34 }
 0x2bd   : > { %1164 = vmatmul.msk.bf16.vlgmr.msrb.gmra.mxu2 %vm695_vm2, %v838_v35  ;;  %v839_v37 = vpack.c.bf16 %v1214_v36, %v1214_v36  ;;  %v833_v38 = vsel %vm695_vm2, %v1214_v36, 0.0 }
 0x2bf   : > { %1165 = vmatmul.msk.bf16.vlgmr.msrb.gmra.mxu3 %vm695_vm2, %v839_v37 }
 0x2c3   : > { %834 = vadd.xlane.f32.xlu1 %v833_v38 }
 0x326   : > { %v826_v42 = vpop.xlane.xlu2 %825 }
 0x327   : > { %1215 = vrcp.f32 %v826_v42 }
 0x32d   : > { %v1216_v53 = vpop.eup %1215 }
 0x32e   : > { %v829_v45 = vpop.xlane.xlu1 %828 }
 0x32f   : > { %v832_v49 = vpop.xlane.xlu2 %831  ;;  %1217 = vrcp.f32 %v829_v45 }
 0x330   : > { %1219 = vrcp.f32 %v832_v49 }
 0x331   : > { %v916_v46 = vpop.f32.mrf.mxu0 }
 0x332   : > { %v996_v56 = vmul.f32 %v1216_v53, %v916_v46 }
 0x334   : > { %v1003_v62 = vrot.slane %v996_v56, 4 }
 0x335   : > { %v1218_v57 = vpop.eup %1217 }
 0x336   : > { %v835_v50 = vpop.xlane.xlu1 %834  ;;  %v1220_v60 = vpop.eup %1219 }
 0x337   : > { %1221 = vrcp.f32 %v835_v50 }
 0x339   : > { %v918_v51 = vpop.f32.mrf.mxu0  ;;  %v940_v52 = vpop.f32.mrf.mxu1 }
 0x33a   : > { %v997_v59 = vmul.f32 %v1218_v57, %v940_v52 }
 0x33c   : > { %v1015_v19 = vrot.slane %v997_v59, 4 }
 0x33d   : > { %v1222_v1 = vpop.eup %1221 }
 0x340   : > { %v964_v61 = vpop.f32.mrf.mxu2 }
 0x341   : > { %v998_v30 = vmul.f32 %v1220_v60, %v964_v61  ;;  %v942_v0 = vpop.f32.mrf.mxu1 }
 0x342   : > { %v988_v33 = vpop.f32.mrf.mxu3 }
 0x343   : > { %v1000_v26 = vrot.slane %v998_v30, 4  ;;  %v1004_v55 = vsel %vm237_vm0, %v998_v30, %v1003_v62  ;;  %v999_v2 = vmul.f32 %v1222_v1, %v988_v33 }
 0x344   : > { %v1012_v63 = vperm.slane %v1004_v55, %v1359_v48 }
 0x345   : > { %v1002_v3 = vsel %vm237_vm0, %v1000_v26, %v996_v56  ;;  %v1013_v4 = vrot.slane %v999_v2, 4  ;;  %v1016_v5 = vsel %vm237_vm0, %v999_v2, %v1015_v19 }
 0x346   : > { %v1008_v6 = vperm.slane %v1002_v3, %v1359_v48  ;;  %v1039_v7 = vrot.slane %v1012_v63, 4  ;;  %v1024_v8 = vperm.slane %v1016_v5, %v1359_v48 }
 0x347   : > { %v1014_v9 = vsel %vm237_vm0, %v1013_v4, %v997_v59 }
 0x348   : > { %v1027_v20 = vrot.slane %v1008_v6, 4  ;;  %v1020_v10 = vperm.slane %v1014_v9, %v1359_v48  ;;  %v1037_v21 = vrot.slane %v1024_v8, 4  ;;  %v1040_v11 = vsel %vm237_vm0, %v1024_v8, %v1039_v7  ;;  %v966_v22 = vpop.f32.mrf.mxu2 }
 0x349   : > { %v1048_v27 = vperm.slane %v1040_v11, %v1279_v15 }
 0x34a   : > { %v1025_v39 = vrot.slane %v1020_v10, 4  ;;  %v1028_v40 = vsel %vm237_vm0, %v1020_v10, %v1027_v20  ;;  %v1038_v41 = vsel %vm237_vm0, %v1037_v21, %v1012_v63  ;;  %v990_v43 = vpop.f32.mrf.mxu3 }
 0x34b   : > { %v1036_v44 = vperm.slane %v1028_v40, %v1279_v15  ;;  %v1044_v47 = vperm.slane %v1038_v41, %v1279_v15  ;;  %1064 = vst.msk [vmem:[%s210_s27 + $0x18] sm:$0xf] %vm1057_vm4, %v1048_v27  ;;  %v1055_v12 = vrot.slane %v1048_v27, 4 }
 0x34c   : > { %v1026_v48 = vsel %vm237_vm0, %v1025_v39, %v1008_v6 }
 0x34d   : > { %v1032_v13 = vperm.slane %v1026_v48, %v1279_v15  ;;  %v1051_v14 = vrot.slane %v1036_v44, 4  ;;  %v1053_v16 = vrot.slane %v1044_v47, 4  ;;  %1060 = vst.msk [vmem:[%s210_s27 + $0x8] sm:$0xf] %vm1057_vm4, %v1036_v44  ;;  %v1056_v58 = vsel %vm237_vm0, 0.0, %v1055_v12 }
 0x34e   : > { %1062 = vst.msk [vmem:[%s210_s27 + $0x10] sm:$0xf] %vm1057_vm4, %v1044_v47 }
 0x34f   : > { %v1049_v54 = vrot.slane %v1032_v13, 4  ;;  %v1052_v17 = vsel %vm237_vm0, 0.0, %v1051_v14  ;;  %v1054_v18 = vsel %vm237_vm0, 0.0, %v1053_v16  ;;  %1058 = vst.msk [vmem:[%s210_s27] sm:$0xf] %vm1057_vm4, %v1032_v13 }
 0x350   : > { %1061 = vst.msk [vmem:[%s210_s27 + $0xc] sm:$0xf] %vm1057_vm4, %v1052_v17 }
 0x351   : > { %v1050_v23 = vsel %vm237_vm0, 0.0, %v1049_v54  ;;  %1063 = vst.msk [vmem:[%s210_s27 + $0x14] sm:$0xf] %vm1057_vm4, %v1054_v18 }
 0x352   : > { %1059 = vst.msk [vmem:[%s210_s27 + $0x4] sm:$0xf] %vm1057_vm4, %v1050_v23 }
 0x353   : > { %1065 = vst.msk [vmem:[%s210_s27 + $0x1c] sm:$0xf] %vm1057_vm4, %v1056_v58 }
 0x354 PF: > { %s13_s12 = sadd.s32 1, %s1229_s12  }
 0x355   : > { %p10_p4 = scmp.ge.s32.totalorder %s13_s12, 4  }
 0x357   :  { %12 = sbr.rel (!%p10_p4) target bundleno = 1 (0x1), region = 76 }

// kernel: text_decoder_forward.30
= control target key start
LH: loop header
LB: loop body
LE: loop exit
PB: predicated region body
PF: predicated region fallthrough
CT: control target
= control target key end

     0   :  { %vm19_vm0 = vcmask 523264   ;;  %v142_v1 = vmov 0.0   ;;  %vm58_vm1 = vcmask 261120   ;;  %s202_s1 = inlined_call_operand.vmem [shape: bf16[32,64], index: 1, kind: input, shape index: {}]   ;;  %s203_s2 = inlined_call_operand.vmem [shape: f32[1,64], index: 2, kind: input, shape index: {}]   ;;  %s204_s0 = inlined_call_operand.vmem [shape: bf16[32,32], index: 0, kind: input, shape index: {}]   ;;  %s205_s3 = inlined_call_operand.vmem [shape: f32[32,64], index: 3, kind: output, shape index: {}]  }
   0x1   :  { %v137_v0 = vld [vmem:[%s202_s1 + $0x8] sm:$0xff]  ;;  %20 = vst.msk [vmem:[#allocation2] sm:$0xff] %vm19_vm0, %v142_v1  ;;  %v136_v2 = vld [vmem:[%s202_s1] sm:$0xff] }
   0x2   :  { %21 = vst.msk [vmem:[#allocation2 + $0x8] sm:$0xff] %vm19_vm0, %v142_v1  ;;  %71 = vmatpush.bf16.msra.mxu0 %v137_v0  ;;  %138 = vmatpush.bf16.msra.mxu1 %v137_v0  ;;  %v134_v3 = vld [vmem:[%s204_s0] sm:$0xff]  ;;  %v135_v4 = vld [vmem:[%s204_s0 + $0x8] sm:$0xff] }
   0x3   :  { %22 = vst.msk [vmem:[#allocation2 + $0x10] sm:$0xff] %vm19_vm0, %v142_v1  ;;  %v141_v13 = vld [vmem:[%s203_s2] ss:$0 sm:$0xff] }
   0x4   :  { %23 = vst.msk [vmem:[#allocation2 + $0x18] sm:$0xff] %vm19_vm0, %v142_v1 }
   0x6   :  { %72 = vmatpush.bf16.msra.mxu0 %v136_v2  ;;  %139 = vmatpush.bf16.msra.mxu1 %v136_v2 }
   0x8   :  { %v24_v5 = vld [vmem:[#allocation2] sm:$0xff] }
   0x9   :  { %132 = vmatmul.msk.bf16.vlgmr.msra.gmra.mxu0 %vm58_vm1, %v134_v3  ;;  %133 = vmatmul.msk.bf16.vlgmr.msra.gmra.mxu1 %vm58_vm1, %v135_v4  ;;  %v25_v11 = vld [vmem:[#allocation2 + $0x8] sm:$0xff] }
   0xa   :  { %v26_v6 = vld [vmem:[#allocation2 + $0x10] sm:$0xff] }
   0xb   :  { %v27_v12 = vld [vmem:[#allocation2 + $0x18] sm:$0xff] }
  0x86   :  { %v74_v7 = vpop.f32.mrf.mxu0  ;;  %v79_v8 = vpop.f32.mrf.mxu1 }
  0x87   :  { %v84_v9 = vadd.f32 %v74_v7, %v24_v5  ;;  %v86_v10 = vadd.f32 %v79_v8, %v26_v6 }
  0x89   :  { %89 = vst.msk [vmem:[#allocation2] sm:$0xff] %vm19_vm0, %v84_v9 }
  0x8a   :  { %91 = vst.msk [vmem:[#allocation2 + $0x10] sm:$0xff] %vm19_vm0, %v86_v10 }
  0x8e   :  { %v76_v14 = vpop.f32.mrf.mxu0  ;;  %v81_v15 = vpop.f32.mrf.mxu1 }
  0x8f   :  { %v85_v16 = vadd.f32 %v76_v14, %v25_v11  ;;  %v87_v17 = vadd.f32 %v81_v15, %v27_v12 }
  0x90   :  { %v96_v18 = vld [vmem:[#allocation2] sm:$0xff] }
  0x91   :  { %v104_v19 = vadd.f32 %v141_v13, %v96_v18  ;;  %v98_v20 = vld [vmem:[#allocation2 + $0x10] sm:$0xff]  ;;  %90 = vst.msk [vmem:[#allocation2 + $0x8] sm:$0xff] %vm19_vm0, %v85_v16 }
  0x92   :  { %v106_v21 = vadd.f32 %v141_v13, %v98_v20  ;;  %92 = vst.msk [vmem:[#allocation2 + $0x18] sm:$0xff] %vm19_vm0, %v87_v17 }
  0x93   :  { %108 = vst.msk [vmem:[%s205_s3] sm:$0xff] %vm19_vm0, %v104_v19 }
  0x94   :  { %110 = vst.msk [vmem:[%s205_s3 + $0x10] sm:$0xff] %vm19_vm0, %v106_v21 }
  0x98   :  { %v97_v22 = vld [vmem:[#allocation2 + $0x8] sm:$0xff] }
  0x99   :  { %v105_v23 = vadd.f32 %v141_v13, %v97_v22  ;;  %v99_v24 = vld [vmem:[#allocation2 + $0x18] sm:$0xff] }
  0x9a   :  { %v107_v25 = vadd.f32 %v141_v13, %v99_v24 }
  0x9b   :  { %109 = vst.msk [vmem:[%s205_s3 + $0x8] sm:$0xff] %vm19_vm0, %v105_v23 }
  0x9c   :  { %111 = vst.msk [vmem:[%s205_s3 + $0x18] sm:$0xff] %vm19_vm0, %v107_v25 }

// kernel: text_decoder_forward.34
= control target key start
LH: loop header
LB: loop body
LE: loop exit
PB: predicated region body
PF: predicated region fallthrough
CT: control target
= control target key end

     0   :  { %vm46_vm0 = vcmask 261120   ;;  %s142_s1 = inlined_call_operand.vmem [shape: bf16[32,128], index: 1, kind: input, shape index: {}]   ;;  %s143_s2 = inlined_call_operand.vmem [shape: f32[1,128], index: 2, kind: input, shape index: {}]   ;;  %s144_s0 = inlined_call_operand.vmem [shape: bf16[16,32], index: 0, kind: input, shape index: {}]   ;;  %s145_s3 = inlined_call_operand.vmem [shape: f32[16,128], index: 3, kind: output, shape index: {}]  }
   0x1   :  { %v102_v0 = vld [vmem:[%s142_s1 + $0x8] sm:$0xff]  ;;  %v101_v1 = vld [vmem:[%s142_s1] sm:$0xff] }
   0x2   :  { %56 = vmatpush.bf16.msra.mxu0 %v102_v0  ;;  %v100_v2 = vld [vmem:[%s144_s0] sm:$0xff] }
   0x3   :  { %v103_v3 = vld [vmem:[%s143_s2] ss:$0 sm:$0xff] }
   0x6   :  { %57 = vmatpush.bf16.msra.mxu0 %v101_v1 }
   0x9   :  { %99 = vmatmul.msk.bf16.vlgmr.msra.gmra.mxu0 %vm46_vm0, %v100_v2 }
  0x86   :  { %v59_v4 = vpop.f32.mrf.mxu0 }
  0x87   :  { %v77_v5 = vadd.f32 %v103_v3, %v59_v4 }
  0x89   :  { %v79_v6 = vmax.f32 %v77_v5, 0.0 }
  0x8b   :  { %81 = vst [vmem:[%s145_s3] sm:$0xff] %v79_v6 }
  0x8e   :  { %v61_v7 = vpop.f32.mrf.mxu0 }
  0x8f   :  { %v78_v8 = vadd.f32 %v103_v3, %v61_v7 }
  0x91   :  { %v80_v9 = vmax.f32 %v78_v8, 0.0 }
  0x93   :  { %82 = vst [vmem:[%s145_s3 + $0x8] sm:$0xff] %v80_v9 }

// kernel: text_decoder_forward.35
= control target key start
LH: loop header
LB: loop body
LE: loop exit
PB: predicated region body
PF: predicated region fallthrough
CT: control target
= control target key end

     0   :  { %vm18_vm0 = vcmask 261120   ;;  %v178_v2 = vmov 0.0   ;;  %s241_s1 = inlined_call_operand.vmem [shape: bf16[128,32], index: 1, kind: input, shape index: {}]   ;;  %s242_s2 = inlined_call_operand.vmem [shape: f32[1,32], index: 2, kind: input, shape index: {}]   ;;  %s243_s0 = inlined_call_operand.vmem [shape: bf16[16,128], index: 0, kind: input, shape index: {}]   ;;  %s244_s3 = inlined_call_operand.vmem [shape: f32[16,32], index: 3, kind: output, shape index: {}]  }
   0x1   :  { %v175_v0 = vld [vmem:[%s241_s1 + $0x38] sm:$0xff]  ;;  %v174_v1 = vld [vmem:[%s241_s1 + $0x30] sm:$0xff]  ;;  %19 = vst.msk [vmem:[#allocation2] sm:$0xff] %vm18_vm0, %v178_v2  ;;  %v173_v3 = vld [vmem:[%s241_s1 + $0x28] sm:$0xff] }
   0x2   :  { %95 = vmatpush.bf16.msra.mxu0 %v175_v0  ;;  %20 = vst.msk [vmem:[#allocation2 + $0x8] sm:$0xff] %vm18_vm0, %v178_v2  ;;  %v172_v4 = vld [vmem:[%s241_s1 + $0x20] sm:$0xff]  ;;  %v171_v5 = vld [vmem:[%s241_s1 + $0x18] sm:$0xff]  ;;  %v170_v6 = vld [vmem:[%s241_s1 + $0x10] sm:$0xff] }
   0x3   :  { %v169_v7 = vld [vmem:[%s241_s1 + $0x8] sm:$0xff]  ;;  %v168_v8 = vld [vmem:[%s241_s1] sm:$0xff] }
   0x4   :  { %v167_v9 = vld [vmem:[%s243_s0] sm:$0xff] }
   0x5   :  { %v177_v14 = vld [vmem:[%s242_s2] ss:$0 sm:$0xff] }
   0x6   :  { %96 = vmatpush.bf16.msra.mxu0 %v174_v1 }
   0x8   :  { %v21_v10 = vld [vmem:[#allocation2] sm:$0xff] }
   0x9   :  { %v22_v13 = vld [vmem:[#allocation2 + $0x8] sm:$0xff] }
   0xa   :  { %97 = vmatpush.bf16.msra.mxu0 %v173_v3 }
   0xe   :  { %98 = vmatpush.bf16.msra.mxu0 %v172_v4 }
  0x12   :  { %99 = vmatpush.bf16.msra.mxu0 %v171_v5 }
  0x16   :  { %100 = vmatpush.bf16.msra.mxu0 %v170_v6 }
  0x1a   :  { %101 = vmatpush.bf16.msra.mxu0 %v169_v7 }
  0x1e   :  { %102 = vmatpush.bf16.msra.mxu0 %v168_v8 }
  0x21   :  { %103 = vmatmul.bf16.vlgmr.msra.gmra.mxu0 %v167_v9 }
  0x9e   :  { %v104_v11 = vpop.f32.mrf.mxu0 }
  0x9f   :  { %v109_v12 = vadd.f32 %v104_v11, %v21_v10 }
  0xa1   :  { %112 = vst.msk [vmem:[#allocation2] sm:$0xff] %vm18_vm0, %v109_v12 }
  0xa6   :  { %v106_v15 = vpop.f32.mrf.mxu0 }
  0xa7   :  { %v110_v16 = vadd.f32 %v106_v15, %v22_v13 }
  0xa8   :  { %v117_v17 = vld [vmem:[#allocation2] sm:$0xff] }
  0xa9   :  { %v123_v18 = vadd.f32 %v177_v14, %v117_v17  ;;  %113 = vst.msk [vmem:[#allocation2 + $0x8] sm:$0xff] %vm18_vm0, %v110_v16 }
  0xab   :  { %125 = vst.msk [vmem:[%s244_s3] sm:$0xff] %vm18_vm0, %v123_v18 }
  0xb0   :  { %v118_v19 = vld [vmem:[#allocation2 + $0x8] sm:$0xff] }
  0xb1   :  { %v124_v20 = vadd.f32 %v177_v14, %v118_v19 }
  0xb3   :  { %126 = vst.msk [vmem:[%s244_s3 + $0x8] sm:$0xff] %vm18_vm0, %v124_v20 }

// kernel: text_decoder_forward.49
= control target key start
LH: loop header
LB: loop body
LE: loop exit
PB: predicated region body
PF: predicated region fallthrough
CT: control target
= control target key end

     0   :  { %vm60_vm0 = vcmask 261120   ;;  %s239_s0 = inlined_call_operand.vmem [shape: bf16[16,32], index: 0, kind: input, shape index: {}]   ;;  %s240_s1 = inlined_call_operand.vmem [shape: bf16[64,32], index: 1, kind: input, shape index: {}]   ;;  %s241_s2 = inlined_call_operand.vmem [shape: f32[1,64], index: 2, kind: input, shape index: {}]   ;;  %s242_s3 = inlined_call_operand.hbm [shape: f32[16,64], index: 3, kind: output, shape index: {}]  }
   0x1   :  { %v151_v0 = vld [vmem:[%s240_s1 + $0x18] sm:$0xff] }
   0x2   :  { %8 = vsyncpa [#allocation4], 0  ;;  %v74_v1 = vsel %vm60_vm0, %v151_v0, 0  ;;  %vm20_vm1 = vcmask 523264   ;;  %v150_v2 = vld [vmem:[%s240_s1 + $0x10] sm:$0xff]  ;;  %v183_v3 = vmov 0.0  }
   0x3   :  { %80 = vmatpush.bf16.xpose.msra.mxu0 %v74_v1  ;;  %21 = vst.msk [vmem:[#allocation2] sm:$0xff] %vm20_vm1, %v183_v3  ;;  %v71_v4 = vsel %vm60_vm0, %v150_v2, 0  ;;  %v149_v5 = vld [vmem:[%s240_s1 + $0x8] sm:$0xff]  ;;  %v148_v7 = vld [vmem:[%s240_s1] sm:$0xff]  ;;  %s114_s26 = sshll.u32 %s242_s3, 4  ;;  %s186_s27 = smov 8   ;;  %s115_s26 = int_to_ptr.hbm [resolvable:$true] %s114_s26 }
   0x4   :  { %22 = vst.msk [vmem:[#allocation2 + $0x8] sm:$0xff] %vm20_vm1, %v183_v3  ;;  %v68_v6 = vsel %vm60_vm0, %v149_v5, 0  ;;  %v65_v8 = vsel %vm60_vm0, %v148_v7, 0  ;;  %v147_v9 = vld [vmem:[%s239_s0] sm:$0xff]  ;;  %s184_s0 = smov [#allocation3]  }
   0x5   :  { %v156_v14 = vld [vmem:[%s241_s2] ss:$0 sm:$0xff]  ;;  %s112_s1 = sshll.u32 %s184_s0, 4  ;;  %s185_s2 = smov 128   ;;  %s113_s1 = int_to_ptr.vmem [resolvable:$true] %s112_s1 }
   0xa   :  { %v23_v10 = vld [vmem:[#allocation2] sm:$0xff] }
   0xb   :  { %81 = vmatpush.bf16.xpose.msra.mxu0 %v71_v4  ;;  %v24_v13 = vld [vmem:[#allocation2 + $0x8] sm:$0xff] }
  0x13   :  { %82 = vmatpush.bf16.xpose.msra.mxu0 %v68_v6 }
  0x1b   :  { %83 = vmatpush.bf16.xpose.msra.mxu0 %v65_v8 }
  0x22   :  { %146 = vmatmul.msk.bf16.vlgmr.msra.gmra.mxu0 %vm60_vm0, %v147_v9 }
  0x9f   :  { %v85_v11 = vpop.f32.mrf.mxu0 }
  0xa0   :  { %v90_v12 = vadd.f32 %v85_v11, %v23_v10 }
  0xa2   :  { %93 = vst.msk [vmem:[#allocation2] sm:$0xff] %vm20_vm1, %v90_v12 }
  0xa7   :  { %v87_v15 = vpop.f32.mrf.mxu0 }
  0xa8   :  { %v91_v16 = vadd.f32 %v87_v15, %v24_v13 }
  0xa9   :  { %v98_v17 = vld [vmem:[#allocation2] sm:$0xff] }
  0xaa   :  { %94 = vst.msk [vmem:[#allocation2 + $0x8] sm:$0xff] %vm20_vm1, %v91_v16  ;;  %v104_v18 = vadd.f32 %v156_v14, %v98_v17 }
  0xac   :  { %106 = vst.msk [vmem:[#allocation3] sm:$0xff] %vm20_vm1, %v104_v18 }
  0xb1   :  { %v99_v19 = vld [vmem:[#allocation2 + $0x8] sm:$0xff] }
  0xb2   :  { %v105_v20 = vadd.f32 %v156_v14, %v99_v19 }
  0xb4   :  { %107 = vst.msk [vmem:[#allocation3 + $0x8] sm:$0xff] %vm20_vm1, %v105_v20 }
  0xb5   :  { %120 = dma.vmem_to_hbm [thread:$0]  %s113_s1, 256, %s115_s26, [#allocation4], %s185_s2, %s185_s2, %s186_s27  }
  0xb6   :  { %181 = dma.done.wait [#allocation4], 256  }
  0xb7   :  { %182 = vsyncadd [#allocation4], 4294967040 }
  0xb8   :  { %125 = vsyncpa [#allocation4], 1 }

// kernel: text_decoder_forward.31
= control target key start
LH: loop header
LB: loop body
LE: loop exit
PB: predicated region body
PF: predicated region fallthrough
CT: control target
= control target key end

     0   :  { %s1533_s12 = smov 0   ;;  %s1745_s0 = inlined_call_operand.vmem [shape: bf16[2,8,4,8], index: 0, kind: input, shape index: {}]   ;;  %s1746_s1 = inlined_call_operand.vmem [shape: bf16[2,16,4,8], index: 1, kind: input, shape index: {}]   ;;  %s1747_s2 = inlined_call_operand.vmem [shape: bf16[2,16,4,8], index: 2, kind: input, shape index: {}]   ;;  %s1748_s3 = inlined_call_operand.vmem [shape: f32[2,8,4,8], index: 3, kind: output, shape index: {}]  }
   0x1 LB: > { %s1413_s13 = sadd.s32 4294967295, %s1509_s12   ;;  %p1417_p0 = scmp.ge.s32.totalorder %s1509_s12, 1  ;;  %s1509_s12 = sphi %s1533_s12, %s13_s12  }
   0x2   : > { %p157_p1 = scmp.lt.s32.totalorder %s1509_s12, 3 }
   0x4   : > { %p158_p2 = pnand %p1417_p0, %p157_p1 }
   0x5   : > { %p191_p3 = scmp.lt.s32.totalorder (!%p158_p2), %s1413_s13, 1 }
   0x6   : > { %161 = sbr.rel (%p158_p2) target bundleno = 861 (0x35d), region = 32 }
   0xb   : > { %s1750_s13 = smov (!%p191_p3, %s1413_s13), 1  ;;  %v1511_v3 = vmov 1934713408   ;;  %vm253_vm0 = vcmask 1047556   ;;  %vm898_vm1 = vcmask 1043456   ;;  %vm895_vm2 = vcmask 64512  }
   0xc   : > { %s1541_s14 = sshll.u32 %s1750_s13, 5  ;;  %s1436_s15 = sshll.u32 %s1750_s13, 4  ;;  %v256_v4 = vunpack.c.l.s4 %v1511_v3  ;;  %vm991_vm3 = vcmask 130048   ;;  %vm1325_vm4 = vcmask 60416  }
   0xd   : > { %s1547_s18 = scalar_lea.vmem %s1746_s1, %s1541_s14  ;;  %s195_s21 = scalar_lea.vmem %s1745_s0, %s1436_s15 }
   0xe   : > { %v224_v0 = vld [vmem:[%s1547_s18 + $0x8] sm:$0x3]  ;;  %v225_v1 = vld [vmem:[%s1547_s18 + $0xa] sm:$0x3]  ;;  %v226_v2 = vld [vmem:[%s1547_s18 + $0xc] sm:$0x3]  ;;  %v1556_v18 = vunpack.c.0.s8 %v256_v4  ;;  %s205_s24 = scalar_lea.vmem %s1747_s2, %s1541_s14  ;;  %s210_s27 = scalar_lea.vmem %s1748_s3, %s1541_s14 }
   0xf   : > { %1451 = vxpose.binary.xlu0.c.b16.start.end [1/2] (short) (narrow) %v225_v1, %v224_v0, 16  ;;  %v212_v5 = vld [vmem:[%s195_s21] sm:$0x3]  ;;  %v213_v6 = vld [vmem:[%s195_s21 + $0x2] sm:$0x3] }
  0x10   : > { %v214_v7 = vld [vmem:[%s195_s21 + $0x4] sm:$0x3]  ;;  %v215_v8 = vld [vmem:[%s195_s21 + $0x6] sm:$0x3]  ;;  %v216_v9 = vld [vmem:[%s195_s21 + $0x8] sm:$0x3] }
  0x11   : > { %v217_v10 = vld [vmem:[%s195_s21 + $0xa] sm:$0x3]  ;;  %v218_v11 = vld [vmem:[%s195_s21 + $0xc] sm:$0x3]  ;;  %v219_v12 = vld [vmem:[%s195_s21 + $0xe] sm:$0x3] }
  0x12   : > { %v252_v13 = vrot.slane %v214_v7, 4  ;;  %v261_v14 = vrot.slane %v215_v8, 4  ;;  %v269_v15 = vrot.slane %v218_v11, 4  ;;  %v277_v16 = vrot.slane %v219_v12, 4  ;;  %v227_v17 = vld [vmem:[%s1547_s18 + $0xe] sm:$0x3] }
  0x13   : > { %1457 = vxpose.binary.xlu1.c.b16.start.end [1/2] (short) (narrow) %v227_v17, %v226_v2, 16  ;;  %v222_v19 = vld [vmem:[%s1547_s18 + $0x4] sm:$0x3]  ;;  %v223_v20 = vld [vmem:[%s1547_s18 + $0x6] sm:$0x3] }
  0x14   : > { %v254_v21 = vsel %vm253_vm0, %v252_v13, %v212_v5  ;;  %v262_v22 = vsel %vm253_vm0, %v261_v14, %v213_v6  ;;  %v270_v23 = vsel %vm253_vm0, %v269_v15, %v216_v9  ;;  %v278_v24 = vsel %vm253_vm0, %v277_v16, %v217_v10  ;;  %v220_v40 = vld [vmem:[%s1547_s18] sm:$0x3]  ;;  %v221_v49 = vld [vmem:[%s1547_s18 + $0x2] sm:$0x3]  ;;  %v232_v53 = vld [vmem:[%s1547_s18 + $0x18] sm:$0x3] }
  0x15   : > { %v258_v25 = vperm.slane %v254_v21, %v1556_v18  ;;  %v266_v26 = vperm.slane %v262_v22, %v1556_v18  ;;  %v274_v27 = vperm.slane %v270_v23, %v1556_v18  ;;  %v282_v28 = vperm.slane %v278_v24, %v1556_v18  ;;  %v233_v54 = vld [vmem:[%s1547_s18 + $0x1a] sm:$0x3]  ;;  %v228_v56 = vld [vmem:[%s1547_s18 + $0x10] sm:$0x3]  ;;  %v229_v57 = vld [vmem:[%s1547_s18 + $0x12] sm:$0x3] }
  0x16   : > { %1463 = vxpose.binary.xlu2.c.b16.start.end [1/2] (short) (narrow) %v223_v20, %v222_v19, 16  ;;  %v234_v61 = vld [vmem:[%s1547_s18 + $0x1c] sm:$0x3]  ;;  %v235_v62 = vld [vmem:[%s1547_s18 + $0x1e] sm:$0x3] }
  0x17   : > { %v259_v29 = vrot.slane %v258_v25, 4  ;;  %v267_v30 = vrot.slane %v266_v26, 4  ;;  %v275_v31 = vrot.slane %v274_v27, 4  ;;  %v283_v32 = vrot.slane %v282_v28, 4  ;;  %v230_v63 = vld [vmem:[%s1547_s18 + $0x14] sm:$0x3] }
  0x18   : > { %v287_v33 = vpack.i.b16 %v266_v26, %v258_v25  ;;  %v299_v34 = vpack.i.b16 %v282_v28, %v274_v27  ;;  %v288_v42 = vshrl.u32 %v258_v25, 16  ;;  %v289_v43 = vshrl.u32 %v266_v26, 16  ;;  %v231_v0 = vld [vmem:[%s1547_s18 + $0x16] sm:$0x3] }
  0x19   : > { %v260_v35 = vsel %vm253_vm0, 0, %v259_v29  ;;  %v268_v36 = vsel %vm253_vm0, 0, %v267_v30  ;;  %v276_v37 = vsel %vm253_vm0, 0, %v275_v31  ;;  %v284_v41 = vsel %vm253_vm0, 0, %v283_v32 }
  0x1a   : > { %v294_v38 = vshrl.u32 %v260_v35, 16  ;;  %v295_v39 = vshrl.u32 %v268_v36, 16  ;;  %890 = vst [vmem:[#allocation1] ss:$4 sm:$0xff] %v287_v33  ;;  %v306_v44 = vshrl.u32 %v276_v37, 16  ;;  %v300_v46 = vshrl.u32 %v274_v27, 16 }
  0x1b   : > { %893 = vst [vmem:[#allocation1 + $0x1] ss:$4 sm:$0xff] %v299_v34  ;;  %v301_v47 = vshrl.u32 %v282_v28, 16  ;;  %v307_v48 = vshrl.u32 %v284_v41, 16  ;;  %v290_v51 = vpack.i.b16 %v289_v43, %v288_v42  ;;  %v293_v58 = vpack.i.b16 %v268_v36, %v260_v35 }
  0x1c   : > { %v1573_v45 = vpack.i.b16 %v295_v39, %v294_v38  ;;  %v305_v59 = vpack.i.b16 %v284_v41, %v276_v37  ;;  %v1512_v10 = vmov 1983009808  }
  0x1d   : > { %v1576_v50 = vpack.i.b16 %v307_v48, %v306_v44  ;;  %v302_v52 = vpack.i.b16 %v301_v47, %v300_v46  ;;  %v568_v11 = vunpack.c.l.s4 %v1512_v10 }
  0x1f   : > { %1454 = vxpose.binary.xlu0.c.b16.start.end [1/2] (short) (narrow) %v221_v49, %v220_v40, 16  ;;  %v1591_v20 = vunpack.c.0.s8 %v568_v11 }
  0x22   : > { %v1580_v55 = vld.sshfl [vmem:[#allocation1] sm:$0xff pattern:$0x73625140] }
  0x23   : > { %916 = vst [vmem:[#allocation1] ss:$4 sm:$0xff] %v290_v51  ;;  %1460 = vxpose.binary.xlu1.c.b16.start.end [1/2] (short) (narrow) %v233_v54, %v232_v53, 16 }
  0x24   : > { %919 = vst [vmem:[#allocation1 + $0x1] ss:$4 sm:$0xff] %v302_v52 }
  0x26   : > { %1466 = vxpose.binary.xlu2.c.b16.start.end [1/2] (short) (narrow) %v229_v57, %v228_v56, 16 }
  0x2b   : > { %v1584_v60 = vld.sshfl [vmem:[#allocation1] sm:$0xff pattern:$0x73625140] }
  0x2c   : > { %940 = vst [vmem:[#allocation1] ss:$4 sm:$0xff] %v293_v58 }
  0x2d   : > { %943 = vst [vmem:[#allocation1 + $0x1] ss:$4 sm:$0xff] %v305_v59 }
  0x2f   : > { %1469 = vxpose.binary.xlu0.c.b16.start.end [1/2] (short) (narrow) %v235_v62, %v234_v61, 16 }
  0x33   : > { %1472 = vxpose.binary.xlu1.c.b16.start.end [1/2] (short) (narrow) %v231_v0, %v230_v63, 16 }
  0xb7   : > { %v1464_v3 = vpop.trf.xlu2 }
  0xbb   : > { %v1452_v1 = vpop.trf.xlu0 }
  0xbc   : > { %v565_v13 = vrot.slane %v1452_v1, 4 }
  0xbf   : > { %v1458_v2 = vpop.trf.xlu1  ;;  %v1465_v6 = vpop.trf.xlu2 }
  0xc0   : > { %v571_v19 = vrot.slane %v1458_v2, 4 }
  0xc2   : > { %v572_v27 = vsel %vm253_vm0, %v571_v19, %v1464_v3 }
  0xc3   : > { %v1453_v4 = vpop.trf.xlu0  ;;  %v576_v35 = vperm.slane %v572_v27, %v1591_v20 }
  0xc4   : > { %v621_v16 = vrot.slane %v1453_v4, 4 }
  0xc5   : > { %v589_v46 = vrot.slane %v576_v35, 4 }
  0xc7   : > { %v1459_v5 = vpop.trf.xlu1  ;;  %v1467_v12 = vpop.trf.xlu2 }
  0xc8   : > { %v627_v21 = vrot.slane %v1459_v5, 4 }
  0xca   : > { %v628_v28 = vsel %vm253_vm0, %v627_v21, %v1465_v6 }
  0xcb   : > { %v1455_v7 = vpop.trf.xlu0  ;;  %v632_v36 = vperm.slane %v628_v28, %v1591_v20 }
  0xcc   : > { %v566_v17 = vsel %vm253_vm0, %v565_v13, %v1455_v7 }
  0xcd   : > { %v570_v24 = vperm.slane %v566_v17, %v1591_v20  ;;  %v645_v47 = vrot.slane %v632_v36, 4 }
  0xcf   : > { %v1461_v8 = vpop.trf.xlu1  ;;  %v591_v32 = vrot.slane %v570_v24, 4  ;;  %v1468_v33 = vpop.trf.xlu2  ;;  %v590_v53 = vsel %vm253_vm0, %v589_v46, %v570_v24 }
  0xd0   : > { %v577_v14 = vrot.slane %v1461_v8, 4  ;;  %v596_v63 = vperm.slane %v590_v53, %v1556_v18 }
  0xd1   : > { %v592_v42 = vsel %vm253_vm0, %v576_v35, %v591_v32 }
  0xd2   : > { %v578_v22 = vsel %vm253_vm0, %v577_v14, %v1467_v12  ;;  %v600_v54 = vperm.slane %v592_v42, %v1556_v18  ;;  %v615_v12 = vrot.slane %v596_v63, 4 }
  0xd3   : > { %v1456_v9 = vpop.trf.xlu0  ;;  %v582_v29 = vperm.slane %v578_v22, %v1591_v20 }
  0xd4   : > { %v622_v23 = vsel %vm253_vm0, %v621_v16, %v1456_v9  ;;  %v619_v3 = vrot.slane %v600_v54, 4 }
  0xd5   : > { %v626_v30 = vperm.slane %v622_v23, %v1591_v20  ;;  %v603_v38 = vrot.slane %v582_v29, 4 }
  0xd7   : > { %v1462_v15 = vpop.trf.xlu1  ;;  %v647_v39 = vrot.slane %v626_v30, 4  ;;  %v646_v56 = vsel %vm253_vm0, %v645_v47, %v626_v30 }
  0xd8   : > { %v633_v31 = vrot.slane %v1462_v15, 4  ;;  %v652_v0 = vperm.slane %v646_v56, %v1556_v18 }
  0xd9   : > { %v648_v51 = vsel %vm253_vm0, %v632_v36, %v647_v39 }
  0xda   : > { %v634_v41 = vsel %vm253_vm0, %v633_v31, %v1468_v33  ;;  %v656_v59 = vperm.slane %v648_v51, %v1556_v18  ;;  %v671_v13 = vrot.slane %v652_v0, 4 }
  0xdb   : > { %v1470_v25 = vpop.trf.xlu0  ;;  %v638_v52 = vperm.slane %v634_v41, %v1591_v20 }
  0xdc   : > { %v583_v26 = vrot.slane %v1470_v25, 4  ;;  %v675_v10 = vrot.slane %v656_v59, 4 }
  0xdd   : > { %v659_v1 = vrot.slane %v638_v52, 4 }
  0xdf   : > { %v1473_v34 = vpop.trf.xlu1 }
  0xe0   : > { %v584_v37 = vsel %vm253_vm0, %v583_v26, %v1473_v34 }
  0xe1   : > { %v588_v40 = vperm.slane %v584_v37, %v1591_v20 }
  0xe3   : > { %v604_v43 = vsel %vm253_vm0, %v588_v40, %v603_v38  ;;  %v1471_v44 = vpop.trf.xlu0  ;;  %v601_v48 = vrot.slane %v588_v40, 4 }
  0xe4   : > { %v639_v49 = vrot.slane %v1471_v44, 4  ;;  %v612_v57 = vperm.slane %v604_v43, %v1556_v18  ;;  %v944_v44 = vld.sshfl [vmem:[#allocation1] sm:$0xff pattern:$0x73625140] }
  0xe5   : > { %v602_v61 = vsel %vm253_vm0, %v601_v48, %v582_v29  ;;  %964 = vst [vmem:[#allocation1] ss:$4 sm:$0xff] %v1573_v45 }
  0xe6   : > { %v617_v4 = vrot.slane %v612_v57, 4  ;;  %v608_v7 = vperm.slane %v602_v61, %v1556_v18  ;;  %v620_v9 = vsel %vm253_vm0, %v612_v57, %v619_v3  ;;  %967 = vst [vmem:[#allocation1 + $0x1] ss:$4 sm:$0xff] %v1576_v50 }
  0xe7   : > { %v1474_v58 = vpop.trf.xlu1  ;;  %v705_v19 = vshrl.u32 %v620_v9, 16 }
  0xe8   : > { %v640_v62 = vsel %vm253_vm0, %v639_v49, %v1474_v58  ;;  %v618_v15 = vsel %vm253_vm0, %v617_v4, %v600_v54  ;;  %v616_v22 = vsel %vm253_vm0, %v608_v7, %v615_v12  ;;  %v613_v36 = vrot.slane %v608_v7, 4 }
  0xe9   : > { %v644_v2 = vperm.slane %v640_v62, %v1591_v20  ;;  %v697_v27 = vshrl.u32 %v618_v15, 16  ;;  %v689_v29 = vshrl.u32 %v616_v22, 16 }
  0xea   : > { %v614_v38 = vsel %vm253_vm0, %v613_v36, %v596_v63 }
  0xeb   : > { %v657_v5 = vrot.slane %v644_v2, 4  ;;  %v660_v6 = vsel %vm253_vm0, %v644_v2, %v659_v1  ;;  %v681_v40 = vshrl.u32 %v614_v38, 16 }
  0xec   : > { %v668_v8 = vperm.slane %v660_v6, %v1556_v18 }
  0xed   : > { %v658_v11 = vsel %vm253_vm0, %v657_v5, %v638_v52 }
  0xee   : > { %v676_v14 = vsel %vm253_vm0, %v668_v8, %v675_v10  ;;  %v673_v16 = vrot.slane %v668_v8, 4  ;;  %v664_v17 = vperm.slane %v658_v11, %v1556_v18 }
  0xef   : > { %v706_v21 = vshrl.u32 %v676_v14, 16  ;;  %v703_v25 = vpack.i.b16 %v676_v14, %v620_v9 }
  0xf0   : > { %v674_v23 = vsel %vm253_vm0, %v673_v16, %v656_v59  ;;  %v672_v24 = vsel %vm253_vm0, %v664_v17, %v671_v13  ;;  %v669_v35 = vrot.slane %v664_v17, 4 }
  0xf1   : > { %v707_v26 = vpack.i.b16 %v706_v21, %v705_v19  ;;  %v698_v28 = vshrl.u32 %v674_v23, 16  ;;  %v690_v30 = vshrl.u32 %v672_v24, 16  ;;  %v695_v31 = vpack.i.b16 %v674_v23, %v618_v15 }
  0xf2   : > { %v687_v33 = vpack.i.b16 %v672_v24, %v616_v22  ;;  %v670_v37 = vsel %vm253_vm0, %v669_v35, %v652_v0 }
  0xf3   : > { %1475 = vxpose.binary.xlu2.c.b16.start.end [1/2] (short) (narrow) %v707_v26, %v703_v25, 16  ;;  %v699_v32 = vpack.i.b16 %v698_v28, %v697_v27  ;;  %v691_v34 = vpack.i.b16 %v690_v30, %v689_v29  ;;  %v682_v39 = vshrl.u32 %v670_v37, 16  ;;  %v679_v41 = vpack.i.b16 %v670_v37, %v614_v38  ;;  %v968_v26 = vld.sshfl [vmem:[#allocation1] sm:$0xff pattern:$0x73625140] }
  0xf5   : > { %1481 = vxpose.binary.xlu1.c.b16.start.end [1/2] (short) (narrow) %v699_v32, %v695_v31, 16  ;;  %v683_v42 = vpack.i.b16 %v682_v39, %v681_v40 }
  0xf6   : > { %1478 = vxpose.binary.xlu0.c.b16.start.end [1/2] (short) (narrow) %v691_v34, %v687_v33, 16 }
 0x103   : > { %1484 = vxpose.binary.xlu2.c.b16.start.end [1/2] (short) (narrow) %v683_v42, %v679_v41, 16  ;;  %v238_v41 = vld [vmem:[%s205_s24 + $0x4] sm:$0x3]  ;;  %v239_v42 = vld [vmem:[%s205_s24 + $0x6] sm:$0x3] }
 0x194   : > { %v1476_v43 = vpop.trf.xlu2 }
 0x195   : > { %v843_v47 = vrot.slane %v1476_v43, 4  ;;  %v242_v43 = vld [vmem:[%s205_s24 + $0xc] sm:$0x3] }
 0x19c   : > { %v1477_v46 = vpop.trf.xlu2 }
 0x19d   : > { %v863_v45 = vrot.slane %v1477_v46, 4  ;;  %v236_v46 = vld [vmem:[%s205_s24] sm:$0x3] }
 0x1a1   : > { %v1482_v48 = vpop.trf.xlu1 }
 0x1a2   : > { %v1479_v49 = vpop.trf.xlu0  ;;  %v837_v51 = vrot.slane %v1482_v48, 4  ;;  %v247_v48 = vld [vmem:[%s205_s24 + $0x16] sm:$0x3] }
 0x1a3   : > { %v844_v52 = vsel %vm253_vm0, %v843_v47, %v1479_v49  ;;  %v246_v47 = vld [vmem:[%s205_s24 + $0x14] sm:$0x3]  ;;  %v237_v49 = vld [vmem:[%s205_s24 + $0x2] sm:$0x3] }
 0x1a4   : > { %v848_v53 = vperm.slane %v844_v52, %v1591_v20  ;;  %v1485_v54 = vpop.trf.xlu2  ;;  %v241_v52 = vld [vmem:[%s205_s24 + $0xa] sm:$0x3] }
 0x1a5   : > { %v838_v56 = vsel %vm253_vm0, %v837_v51, %v1485_v54  ;;  %v240_v51 = vld [vmem:[%s205_s24 + $0x8] sm:$0x3]  ;;  %v245_v54 = vld [vmem:[%s205_s24 + $0x12] sm:$0x3] }
 0x1a6   : > { %v849_v57 = vrot.slane %v848_v53, 4  ;;  %v842_v58 = vperm.slane %v838_v56, %v1591_v20  ;;  %v244_v53 = vld [vmem:[%s205_s24 + $0x10] sm:$0x3]  ;;  %v248_v56 = vld [vmem:[%s205_s24 + $0x18] sm:$0x3] }
 0x1a8   : > { %v850_v59 = vsel %vm253_vm0, %v849_v57, %v842_v58  ;;  %v250_v57 = vld [vmem:[%s205_s24 + $0x1c] sm:$0x3]  ;;  %v251_v58 = vld [vmem:[%s205_s24 + $0x1e] sm:$0x3] }
 0x1a9   : > { %v1483_v61 = vpop.trf.xlu1  ;;  %v854_v0 = vperm.slane %v850_v59, %v1556_v18  ;;  %v1032_v59 = vrot.slane %v238_v41, 4 }
 0x1aa   : > { %v1480_v50 = vpop.trf.xlu0  ;;  %v857_v62 = vrot.slane %v1483_v61, 4  ;;  %v1048_v61 = vrot.slane %v242_v43, 4 }
 0x1ab   : > { %v864_v63 = vsel %vm253_vm0, %v863_v45, %v1480_v50  ;;  %v855_v6 = vrot.slane %v854_v0, 4  ;;  %v880_v9 = vshrl.u32 %v854_v0, 16  ;;  %v1040_v45 = vrot.slane %v239_v42, 4 }
 0x1ac   : > { %v868_v1 = vperm.slane %v864_v63, %v1591_v20  ;;  %v1486_v2 = vpop.trf.xlu2  ;;  %v1064_v63 = vrot.slane %v246_v47, 4 }
 0x1ad   : > { %v858_v3 = vsel %vm253_vm0, %v857_v62, %v1486_v2  ;;  %v856_v12 = vsel %vm253_vm0, 0, %v855_v6  ;;  %v249_v62 = vld [vmem:[%s205_s24 + $0x1a] sm:$0x3]  ;;  %v1088_v2 = vrot.slane %v251_v58, 4 }
 0x1ae   : > { %v869_v4 = vrot.slane %v868_v1, 4  ;;  %v862_v5 = vperm.slane %v858_v3, %v1591_v20  ;;  %v886_v19 = vshrl.u32 %v856_v12, 16  ;;  %v1080_v1 = vrot.slane %v250_v57, 4 }
 0x1af   : > { %v1033_v3 = vsel %vm253_vm0, %v1032_v59, %v236_v46 }
 0x1b0   : > { %v870_v7 = vsel %vm253_vm0, %v869_v4, %v862_v5  ;;  %v1041_v4 = vsel %vm253_vm0, %v1040_v45, %v237_v49  ;;  %v1049_v5 = vsel %vm253_vm0, %v1048_v61, %v240_v51 }
 0x1b1   : > { %v874_v8 = vperm.slane %v870_v7, %v1556_v18  ;;  %v1037_v7 = vperm.slane %v1033_v3, %v1556_v18 }
 0x1b3   : > { %v879_v10 = vpack.i.b16 %v874_v8, %v854_v0  ;;  %v881_v11 = vshrl.u32 %v874_v8, 16  ;;  %v875_v13 = vrot.slane %v874_v8, 4  ;;  %v1072_v0 = vrot.slane %v247_v48, 4 }
 0x1b4   : > { %v1045_v8 = vperm.slane %v1041_v4, %v1556_v18 }
 0x1b5   : > { %v900_v14 = vsel %vm898_vm1, %v879_v10, 0  ;;  %v882_v15 = vpack.i.b16 %v881_v11, %v880_v9  ;;  %v876_v16 = vsel %vm253_vm0, 0, %v875_v13  ;;  %v1053_v9 = vperm.slane %v1049_v5, %v1556_v18 }
 0x1b6   : > { %909 = vmatpush.bf16.msra.mxu0 %v900_v14  ;;  %v885_v17 = vpack.i.b16 %v876_v16, %v856_v12  ;;  %v887_v21 = vshrl.u32 %v876_v16, 16  ;;  %v1065_v11 = vsel %vm253_vm0, %v1064_v63, %v244_v53  ;;  %v1073_v12 = vsel %vm253_vm0, %v1072_v0, %v245_v54 }
 0x1b7   : > { %v924_v22 = vsel %vm898_vm1, %v882_v15, 0  ;;  %v1081_v13 = vsel %vm253_vm0, %v1080_v1, %v248_v56  ;;  %v1089_v14 = vsel %vm253_vm0, %v1088_v2, %v249_v62  ;;  %v1069_v15 = vperm.slane %v1065_v11, %v1556_v18 }
 0x1b8   : > { %933 = vmatpush.bf16.msra.mxu1 %v924_v22  ;;  %v948_v23 = vsel %vm898_vm1, %v885_v17, 0  ;;  %v888_v24 = vpack.i.b16 %v887_v21, %v886_v19  ;;  %v1077_v16 = vperm.slane %v1073_v12, %v1556_v18  ;;  %v1085_v17 = vperm.slane %v1081_v13, %v1556_v18 }
 0x1b9   : > { %1426 = vmatmul.msk.bf16.vlgmr.msra.gmra.mxu0 %vm895_vm2, %v1580_v55  ;;  %957 = vmatpush.bf16.msra.mxu2 %v948_v23  ;;  %v1093_v19 = vperm.slane %v1089_v14, %v1556_v18  ;;  %v1098_v21 = vpack.i.b16 %v1045_v8, %v1037_v7  ;;  %v1046_v41 = vrot.slane %v1045_v8, 4  ;;  %v1054_v42 = vrot.slane %v1053_v9, 4 }
 0x1ba   : > { %v972_v25 = vsel %vm898_vm1, %v888_v24, 0  ;;  %v1122_v23 = vpack.i.b16 %v1077_v16, %v1069_v15  ;;  %v1078_v46 = vrot.slane %v1077_v16, 4  ;;  %v1086_v47 = vrot.slane %v1085_v17, 4 }
 0x1bb   : > { %981 = vmatpush.bf16.msra.mxu3 %v972_v25  ;;  %1427 = vmatmul.msk.bf16.vlgmr.msra.gmra.mxu1 %vm895_vm2, %v1584_v60  ;;  %v1134_v24 = vpack.i.b16 %v1093_v19, %v1085_v17  ;;  %1145 = vst [vmem:[#allocation1] ss:$4 sm:$0xff] %v1098_v21  ;;  %v1099_v25 = vshrl.u32 %v1037_v7, 16  ;;  %v1094_v48 = vrot.slane %v1093_v19, 4  ;;  %v1047_v51 = vsel %vm253_vm0, 0, %v1046_v41 }
 0x1bc   : > { %1428 = vmatmul.msk.bf16.vlgmr.msra.gmra.mxu2 %vm895_vm2, %v944_v44  ;;  %v243_v44 = vld [vmem:[%s205_s24 + $0xe] sm:$0x3]  ;;  %1151 = vst [vmem:[#allocation1 + $0x2] ss:$4 sm:$0xff] %v1122_v23  ;;  %v1079_v56 = vsel %vm253_vm0, 0, %v1078_v46  ;;  %v1087_v57 = vsel %vm253_vm0, 0, %v1086_v47 }
 0x1bd   : > { %v1056_v50 = vrot.slane %v243_v44, 4  ;;  %1154 = vst [vmem:[#allocation1 + $0x3] ss:$4 sm:$0xff] %v1134_v24  ;;  %v1070_v44 = vrot.slane %v1069_v15, 4  ;;  %v1095_v58 = vsel %vm253_vm0, 0, %v1094_v48  ;;  %v1106_v0 = vshrl.u32 %v1047_v51, 16 }
 0x1be   : > { %1429 = vmatmul.msk.bf16.vlgmr.msra.gmra.mxu3 %vm895_vm2, %v968_v26  ;;  %v1100_v26 = vshrl.u32 %v1045_v8, 16  ;;  %v1130_v4 = vshrl.u32 %v1079_v56, 16  ;;  %v1141_v5 = vshrl.u32 %v1087_v57, 16 }
 0x1bf   : > { %v1057_v6 = vsel %vm253_vm0, %v1056_v50, %v241_v52  ;;  %v1055_v52 = vsel %vm253_vm0, 0, %v1054_v42  ;;  %v1071_v54 = vsel %vm253_vm0, 0, %v1070_v44  ;;  %v1140_v50 = vpack.i.b16 %v1095_v58, %v1087_v57 }
 0x1c0   : > { %v1061_v10 = vperm.slane %v1057_v6, %v1556_v18  ;;  %v1128_v61 = vpack.i.b16 %v1079_v56, %v1071_v54  ;;  %v1117_v1 = vshrl.u32 %v1055_v52, 16  ;;  %v1129_v3 = vshrl.u32 %v1071_v54, 16 }
 0x1c1   : > { %v1142_v6 = vshrl.u32 %v1095_v58, 16 }
 0x1c2   : > { %v1110_v22 = vpack.i.b16 %v1061_v10, %v1053_v9  ;;  %v1062_v43 = vrot.slane %v1061_v10, 4 }
 0x1c4   : > { %1148 = vst [vmem:[#allocation1 + $0x1] ss:$4 sm:$0xff] %v1110_v22  ;;  %v1063_v53 = vsel %vm253_vm0, 0, %v1062_v43 }
 0x1c5   : > { %v1116_v45 = vpack.i.b16 %v1063_v53, %v1055_v52  ;;  %v1118_v2 = vshrl.u32 %v1063_v53, 16 }
 0x1c7   : > { %v1119_v8 = vpack.i.b16 %v1118_v2, %v1117_v1 }
 0x236   : > { %v911_v27 = vpop.f32.mrf.mxu0 }
 0x237   : > { %v1654_v28 = vmul.f32 0.35355338, %v911_v27  ;;  %v1111_v27 = vshrl.u32 %v1053_v9, 16  ;;  %v1131_v9 = vpack.i.b16 %v1130_v4, %v1129_v3 }
 0x238   : > { %v935_v29 = vpop.f32.mrf.mxu1 }
 0x239   : > { %v992_v30 = vsel %vm991_vm3, %v1654_v28, -inf  ;;  %v1666_v37 = vmul.f32 0.35355338, %v935_v29  ;;  %v1112_v29 = vshrl.u32 %v1061_v10, 16  ;;  %v1143_v10 = vpack.i.b16 %v1142_v6, %v1141_v5 }
 0x23a   : > { %993 = vmax.xlane.f32.xlu2 %v992_v30  ;;  %v1123_v30 = vshrl.u32 %v1069_v15, 16 }
 0x23b   : > { %v995_v40 = vsel %vm991_vm3, %v1666_v37, -inf }
 0x23e   : > { %v913_v55 = vpop.f32.mrf.mxu0 }
 0x23f   : > { %v959_v31 = vpop.f32.mrf.mxu2  ;;  %v1124_v55 = vshrl.u32 %v1077_v16, 16 }
 0x240   : > { %v1658_v32 = vmul.f32 0.35355338, %v959_v31  ;;  %v937_v33 = vpop.f32.mrf.mxu1  ;;  %v1135_v31 = vshrl.u32 %v1085_v17, 16 }
 0x241   : > { %v983_v34 = vpop.f32.mrf.mxu3  ;;  %v1136_v33 = vshrl.u32 %v1093_v19, 16 }
 0x242   : > { %v1660_v35 = vmul.f32 0.35355338, %v983_v34  ;;  %v998_v60 = vsel %vm991_vm3, %v1658_v32, -inf  ;;  %v1101_v34 = vpack.i.b16 %v1100_v26, %v1099_v25 }
 0x243   : > { %999 = vmax.xlane.f32.xlu0 %v998_v60  ;;  %v1113_v60 = vpack.i.b16 %v1112_v29, %v1111_v27 }
 0x244   : > { %v1001_v36 = vsel %vm991_vm3, %v1660_v35, -inf }
 0x245   : > { %1002 = vmax.xlane.f32.xlu1 %v1001_v36  ;;  %v1125_v36 = vpack.i.b16 %v1124_v55, %v1123_v30 }
 0x247   : > { %v961_v38 = vpop.f32.mrf.mxu2 }
 0x248   : > { %v1155_v38 = vld.sshfl [vmem:[#allocation1] sm:$0xff pattern:$0x73625140] }
 0x249   : > { %v985_v39 = vpop.f32.mrf.mxu3  ;;  %1167 = vmatpush.bf16.msrb.mxu0 %v1155_v38  ;;  %1174 = vst [vmem:[#allocation1] ss:$4 sm:$0xff] %v1101_v34 }
 0x24a   : > { %v1137_v39 = vpack.i.b16 %v1136_v33, %v1135_v31  ;;  %1177 = vst [vmem:[#allocation1 + $0x1] ss:$4 sm:$0xff] %v1113_v60 }
 0x24b   : > { %1180 = vst [vmem:[#allocation1 + $0x2] ss:$4 sm:$0xff] %v1125_v36 }
 0x24c   : > { %1183 = vst [vmem:[#allocation1 + $0x3] ss:$4 sm:$0xff] %v1137_v39 }
 0x24d   : > { %996 = vmax.xlane.f32.xlu1 %v995_v40  ;;  %v1038_v40 = vrot.slane %v1037_v7, 4 }
 0x24f   : > { %v1039_v49 = vsel %vm253_vm0, 0, %v1038_v40 }
 0x250   : > { %v1104_v59 = vpack.i.b16 %v1047_v51, %v1039_v49  ;;  %v1105_v63 = vshrl.u32 %v1039_v49, 16 }
 0x252   : > { %v1107_v7 = vpack.i.b16 %v1106_v0, %v1105_v63 }
 0x253   : > { %v1184_v62 = vld.sshfl [vmem:[#allocation1] sm:$0xff pattern:$0x73625140] }
 0x254   : > { %1203 = vst [vmem:[#allocation1] ss:$4 sm:$0xff] %v1104_v59  ;;  %1196 = vmatpush.bf16.msrb.mxu1 %v1184_v62 }
 0x255   : > { %1206 = vst [vmem:[#allocation1 + $0x1] ss:$4 sm:$0xff] %v1116_v45 }
 0x256   : > { %1209 = vst [vmem:[#allocation1 + $0x2] ss:$4 sm:$0xff] %v1128_v61 }
 0x257   : > { %1212 = vst [vmem:[#allocation1 + $0x3] ss:$4 sm:$0xff] %v1140_v50 }
 0x25e   : > { %v1213_v11 = vld.sshfl [vmem:[#allocation1] sm:$0xff pattern:$0x73625140] }
 0x25f   : > { %1225 = vmatpush.bf16.msrb.mxu2 %v1213_v11  ;;  %1232 = vst [vmem:[#allocation1] ss:$4 sm:$0xff] %v1107_v7 }
 0x260   : > { %1235 = vst [vmem:[#allocation1 + $0x1] ss:$4 sm:$0xff] %v1119_v8 }
 0x261   : > { %1238 = vst [vmem:[#allocation1 + $0x2] ss:$4 sm:$0xff] %v1131_v9 }
 0x262   : > { %1241 = vst [vmem:[#allocation1 + $0x3] ss:$4 sm:$0xff] %v1143_v10 }
 0x269   : > { %v1242_v15 = vld.sshfl [vmem:[#allocation1] sm:$0xff pattern:$0x73625140] }
 0x26a   : > { %1254 = vmatpush.bf16.msrb.mxu3 %v1242_v15 }
 0x2ad   : > { %v994_v12 = vpop.xlane.xlu2 %993 }
 0x2ae   : > { %v1004_v13 = vsub.f32 %v1654_v28, %v994_v12 }
 0x2b0   : > { %v1008_v14 = vmul.f32 1.442695, %v1004_v13 }
 0x2b2   : > { %1487 = vpow2.f32 %v1008_v14 }
 0x2b6   : > { %v1000_v16 = vpop.xlane.xlu0 %999 }
 0x2b7   : > { %v1006_v17 = vsub.f32 %v1658_v32, %v1000_v16 }
 0x2b8   : > { %v1488_v19 = vpop.eup %1487  ;;  %v1003_v21 = vpop.xlane.xlu1 %1002 }
 0x2b9   : > { %v1012_v22 = vmul.f32 1.442695, %v1006_v17  ;;  %v1007_v23 = vsub.f32 %v1660_v35, %v1003_v21  ;;  %v1016_v24 = vsel %vm991_vm3, %v1488_v19, 0.0  ;;  %v1028_v25 = vpack.c.bf16 %v1488_v19, %v1488_v19 }
 0x2ba   : > { %1017 = vadd.xlane.f32.xlu1 %v1016_v24 }
 0x2bb   : > { %1489 = vpow2.f32 %v1012_v22  ;;  %v1014_v26 = vmul.f32 1.442695, %v1007_v23  ;;  %1430 = vmatmul.msk.bf16.vlgmr.msrb.gmra.mxu0 %vm991_vm3, %v1028_v25 }
 0x2bd   : > { %1491 = vpow2.f32 %v1014_v26 }
 0x2c0   : > { %v997_v28 = vpop.xlane.xlu1 %996 }
 0x2c1   : > { %v1490_v27 = vpop.eup %1489  ;;  %v1005_v29 = vsub.f32 %v1666_v37, %v997_v28 }
 0x2c2   : > { %v1022_v32 = vsel %vm991_vm3, %v1490_v27, 0.0  ;;  %v1030_v30 = vpack.c.bf16 %v1490_v27, %v1490_v27 }
 0x2c3   : > { %v1492_v55 = vpop.eup %1491  ;;  %v1010_v31 = vmul.f32 1.442695, %v1005_v29  ;;  %1023 = vadd.xlane.f32.xlu0 %v1022_v32 }
 0x2c4   : > { %1432 = vmatmul.msk.bf16.vlgmr.msrb.gmra.mxu2 %vm991_vm3, %v1030_v30  ;;  %v1025_v35 = vsel %vm991_vm3, %v1492_v55, 0.0  ;;  %v1031_v33 = vpack.c.bf16 %v1492_v55, %v1492_v55 }
 0x2c5   : > { %1493 = vpow2.f32 %v1010_v31  ;;  %1026 = vadd.xlane.f32.xlu2 %v1025_v35 }
 0x2c6   : > { %1433 = vmatmul.msk.bf16.vlgmr.msrb.gmra.mxu3 %vm991_vm3, %v1031_v33 }
 0x2cb   : > { %v1494_v34 = vpop.eup %1493 }
 0x2cc   : > { %v1019_v60 = vsel %vm991_vm3, %v1494_v34, 0.0  ;;  %v1029_v36 = vpack.c.bf16 %v1494_v34, %v1494_v34 }
 0x2cd   : > { %1020 = vadd.xlane.f32.xlu1 %v1019_v60 }
 0x2ce   : > { %1431 = vmatmul.msk.bf16.vlgmr.msrb.gmra.mxu1 %vm991_vm3, %v1029_v36 }
 0x32d   : > { %v1018_v38 = vpop.xlane.xlu1 %1017 }
 0x32e   : > { %1495 = vrcp.f32 %v1018_v38 }
 0x334   : > { %v1496_v43 = vpop.eup %1495 }
 0x336   : > { %v1024_v39 = vpop.xlane.xlu0 %1023 }
 0x337   : > { %1497 = vrcp.f32 %v1024_v39 }
 0x338   : > { %v1169_v37 = vpop.f32.mrf.mxu0  ;;  %v1027_v40 = vpop.xlane.xlu2 %1026 }
 0x339   : > { %1499 = vrcp.f32 %v1027_v40  ;;  %v1264_v44 = vmul.f32 %v1496_v43, %v1169_v37 }
 0x33b   : > { %v1271_v48 = vrot.slane %v1264_v44, 4 }
 0x33d   : > { %v1498_v46 = vpop.eup %1497 }
 0x33f   : > { %v1500_v51 = vpop.eup %1499 }
 0x340   : > { %v1171_v41 = vpop.f32.mrf.mxu0  ;;  %v1021_v42 = vpop.xlane.xlu1 %1020 }
 0x341   : > { %1501 = vrcp.f32 %v1021_v42 }
 0x347   : > { %v1227_v47 = vpop.f32.mrf.mxu2  ;;  %v1502_v57 = vpop.eup %1501 }
 0x348   : > { %v1266_v49 = vmul.f32 %v1498_v46, %v1227_v47 }
 0x349   : > { %v1256_v52 = vpop.f32.mrf.mxu3 }
 0x34a   : > { %v1268_v53 = vrot.slane %v1266_v49, 4  ;;  %v1272_v54 = vsel %vm253_vm0, %v1266_v49, %v1271_v48  ;;  %v1267_v56 = vmul.f32 %v1500_v51, %v1256_v52 }
 0x34b   : > { %v1198_v58 = vpop.f32.mrf.mxu1  ;;  %v1280_v62 = vperm.slane %v1272_v54, %v1591_v20 }
 0x34c   : > { %v1270_v59 = vsel %vm253_vm0, %v1268_v53, %v1264_v44  ;;  %v1281_v45 = vrot.slane %v1267_v56, 4  ;;  %v1265_v61 = vmul.f32 %v1502_v57, %v1198_v58 }
 0x34d   : > { %v1276_v50 = vperm.slane %v1270_v59, %v1591_v20  ;;  %v1307_v5 = vrot.slane %v1280_v62, 4 }
 0x34e   : > { %v1282_v63 = vsel %vm253_vm0, %v1281_v45, %v1265_v61  ;;  %v1283_v0 = vrot.slane %v1265_v61, 4 }
 0x34f   : > { %v1295_v1 = vrot.slane %v1276_v50, 4  ;;  %v1288_v2 = vperm.slane %v1282_v63, %v1591_v20  ;;  %v1229_v3 = vpop.f32.mrf.mxu2 }
 0x350   : > { %v1284_v4 = vsel %vm253_vm0, %v1267_v56, %v1283_v0 }
 0x351   : > { %v1292_v6 = vperm.slane %v1284_v4, %v1591_v20  ;;  %v1293_v7 = vrot.slane %v1288_v2, 4  ;;  %v1296_v8 = vsel %vm253_vm0, %v1288_v2, %v1295_v1  ;;  %v1258_v9 = vpop.f32.mrf.mxu3 }
 0x352   : > { %v1304_v10 = vperm.slane %v1296_v8, %v1556_v18 }
 0x353   : > { %v1294_v11 = vsel %vm253_vm0, %v1293_v7, %v1276_v50  ;;  %v1305_v12 = vrot.slane %v1292_v6, 4  ;;  %v1308_v13 = vsel %vm253_vm0, %v1292_v6, %v1307_v5  ;;  %v1200_v14 = vpop.f32.mrf.mxu1 }
 0x354   : > { %v1300_v15 = vperm.slane %v1294_v11, %v1556_v18  ;;  %v1316_v16 = vperm.slane %v1308_v13, %v1556_v18  ;;  %v1319_v17 = vrot.slane %v1304_v10, 4  ;;  %1328 = vst.msk [vmem:[%s210_s27 + $0x8] sm:$0xf] %vm1325_vm4, %v1304_v10 }
 0x355   : > { %v1306_v20 = vsel %vm253_vm0, %v1305_v12, %v1280_v62 }
 0x356   : > { %v1312_v19 = vperm.slane %v1306_v20, %v1556_v18  ;;  %v1317_v21 = vrot.slane %v1300_v15, 4  ;;  %v1320_v22 = vsel %vm253_vm0, 0.0, %v1319_v17  ;;  %v1323_v23 = vrot.slane %v1316_v16, 4  ;;  %1326 = vst.msk [vmem:[%s210_s27] sm:$0xf] %vm1325_vm4, %v1300_v15 }
 0x357   : > { %1329 = vst.msk [vmem:[%s210_s27 + $0xc] sm:$0xf] %vm1325_vm4, %v1320_v22 }
 0x358   : > { %v1318_v24 = vsel %vm253_vm0, 0.0, %v1317_v21  ;;  %v1321_v25 = vrot.slane %v1312_v19, 4  ;;  %1330 = vst.msk [vmem:[%s210_s27 + $0x10] sm:$0xf] %vm1325_vm4, %v1312_v19  ;;  %v1324_v26 = vsel %vm253_vm0, 0.0, %v1323_v23 }
 0x359   : > { %1327 = vst.msk [vmem:[%s210_s27 + $0x4] sm:$0xf] %vm1325_vm4, %v1318_v24 }
 0x35a   : > { %v1322_v28 = vsel %vm253_vm0, 0.0, %v1321_v25  ;;  %1332 = vst.msk [vmem:[%s210_s27 + $0x18] sm:$0xf] %vm1325_vm4, %v1316_v16 }
 0x35b   : > { %1331 = vst.msk [vmem:[%s210_s27 + $0x14] sm:$0xf] %vm1325_vm4, %v1322_v28 }
 0x35c   : > { %1333 = vst.msk [vmem:[%s210_s27 + $0x1c] sm:$0xf] %vm1325_vm4, %v1324_v26 }
 0x35d PF: > { %s13_s12 = sadd.s32 1, %s1509_s12  }
 0x35e   : > { %p10_p4 = scmp.ge.s32.totalorder %s13_s12, 4  }
 0x360   :  { %12 = sbr.rel (!%p10_p4) target bundleno = 1 (0x1), region = 84 }

</bundles_post_ra>
